<compile_context>
chip_gen: v5e
topology: v5e:2x2
jax: 0.10.0
libtpu: 0.0.40
codegen_flags: <defaults>
</compile_context>

<pallas_src>
import jax
import jax.numpy as jnp
from jax.experimental import pallas as pl
from jax.experimental.pallas import tpu as pltpu

LANE = 128  # vreg lane width; each GRU gate is padded to one full lane block.


def _encoder_gru_kernel(lens_ref, x_ref, h0_ref, wih_ref, whh_ref,
                        bih_ref, bhh_ref, out_ref, state_ref):
    """Full GRU recurrence over all timesteps in one kernel invocation.

    Shapes (all VMEM-resident, G = 128 padded gate width):
      lens_ref  (B, 1) int32      x_ref  (T*B, D) time-major   h0_ref (B, G)
      wih_ref   (D, 3G)           whh_ref (G, 3G)
      bih_ref   (1, 3G)           bhh_ref (1, 3G)
      out_ref   (B, T*G)          state_ref (B, G)
    """
    B, G = h0_ref.shape
    TB, _ = x_ref.shape
    T = TB // B

    # ---- Hoisted input projection: one GEMM for every timestep at once.  x is
    # already time-major & flattened by the wrapper, so no in-kernel reshape and
    # each step below is a contiguous leading-row slice (no cross-sublane gather).
    gi_flat = (jnp.dot(x_ref[...], wih_ref[...],
                       preferred_element_type=jnp.float32)
               + bih_ref[...])                                    # (T*B, 3G)

    w_hh = whh_ref[...]                                           # (G, 3G)
    b_hh = bhh_ref[...]                                           # (1, 3G)
    lens = lens_ref[...]                                          # (B, 1)
    h = h0_ref[...]                                               # (B, G), padded lanes are 0

    # ---- Sequential recurrence, fully unrolled (T is small and static). ----
    outs = []
    for t in range(T):
        gi = gi_flat[t * B:(t + 1) * B, :]                        # (B, 3G)
        gh = jnp.dot(h, w_hh, preferred_element_type=jnp.float32) + b_hh

        # Gate slices land exactly on 128-lane vreg boundaries (free).
        r_pre = gi[:, 0:G] + gh[:, 0:G]
        z_pre = gi[:, G:2 * G] + gh[:, G:2 * G]
        # sigmoid(x) == 0.5*(tanh(0.5*x)+1): single EUP op per gate.
        r = 0.5 * jnp.tanh(0.5 * r_pre) + 0.5
        z = 0.5 * jnp.tanh(0.5 * z_pre) + 0.5
        n = jnp.tanh(gi[:, 2 * G:3 * G] + r * gh[:, 2 * G:3 * G])
        h_new = (1.0 - z) * n + z * h                             # (B, G)

        # Packed-sequence masking: only update / emit where t < length[b].
        mask = lens > t                                           # (B, 1)
        h = jnp.where(mask, h_new, h)
        outs.append(jnp.where(mask, h_new, 0.0))

    # Single lane-dense, unmasked output store (B, T*G); wrapper reshapes/slices.
    out_ref[...] = jnp.concatenate(outs, axis=1).astype(out_ref.dtype)
    state_ref[...] = h.astype(state_ref.dtype)


def prepare_encoder_params(params, hidden_size):
    """One-time parameter prep (PyTorch layout -> lane-padded kernel layout).

    Do this at parameter-load time, not per forward call: transposes, gate
    padding to 128-lane blocks, and f32 casts are pure layout plumbing.
    """
    H = hidden_size
    G = LANE
    assert H <= G, "pad-to-one-vreg gate layout assumes hidden_size <= 128"
    w_ih_t = jnp.transpose(params["w_ih"]).astype(jnp.float32)    # (D, 3H)
    w_hh_t = jnp.transpose(params["w_hh"]).astype(jnp.float32)    # (H, 3H)
    b_ih = params["b_ih"].astype(jnp.float32)                     # (3H,)
    b_hh = params["b_hh"].astype(jnp.float32)                     # (3H,)
    D = w_ih_t.shape[0]

    w_ih_p = jnp.zeros((D, 3 * G), jnp.float32)
    w_hh_p = jnp.zeros((G, 3 * G), jnp.float32)
    b_ih_p = jnp.zeros((1, 3 * G), jnp.float32)
    b_hh_p = jnp.zeros((1, 3 * G), jnp.float32)
    for g in range(3):
        w_ih_p = w_ih_p.at[:, g * G:g * G + H].set(w_ih_t[:, g * H:(g + 1) * H])
        w_hh_p = w_hh_p.at[:H, g * G:g * G + H].set(w_hh_t[:, g * H:(g + 1) * H])
        b_ih_p = b_ih_p.at[0, g * G:g * G + H].set(b_ih[g * H:(g + 1) * H])
        b_hh_p = b_hh_p.at[0, g * G:g * G + H].set(b_hh[g * H:(g + 1) * H])

    return {"w_ih": w_ih_p, "w_hh": w_hh_p, "b_ih": b_ih_p, "b_hh": b_hh_p,
            "H": H, "G": G}


def encoder_rnn_forward(inputs, hidden, input_lengths, prepared):
    """inputs: (B, T, D) batch-first, hidden: (1, B, H), input_lengths: (B,) int32.

    Returns (output, state): output (B, T, H) zero-padded past lengths,
    state (1, B, H) = hidden at each sequence's last valid step.
    """
    B, T, D = inputs.shape
    H, G = prepared["H"], prepared["G"]

    # Time-major flatten (row = t*B + b); done wrapper-side so the kernel never
    # reshapes x and the per-step gi slice is a contiguous leading-row slice.
    x_tm = jnp.swapaxes(inputs.astype(jnp.float32), 0, 1).reshape(T * B, D)

    h0 = jnp.zeros((B, G), jnp.float32).at[:, :H].set(hidden[0].astype(jnp.float32))
    lens = input_lengths.astype(jnp.int32).reshape(B, 1)

    vmem = pl.BlockSpec(memory_space=pltpu.MemorySpace.VMEM)

    out_p, state_p = pl.pallas_call(
        _encoder_gru_kernel,
        out_shape=(
            jax.ShapeDtypeStruct((B, T * G), jnp.float32),
            jax.ShapeDtypeStruct((B, G), jnp.float32),
        ),
        # No grid: single invocation, every operand is a whole-array VMEM block
        # (total footprint << default scoped VMEM on all chips at these shapes).
        in_specs=[vmem] * 7,
        out_specs=(vmem, vmem),
    )(lens, x_tm, h0, prepared["w_ih"], prepared["w_hh"],
      prepared["b_ih"], prepared["b_hh"])

    # Free contiguous reshape + tiny lane slice, both outside the kernel.
    output = out_p.reshape(B, T, G)[:, :, :H].astype(inputs.dtype)
    state = state_p[:, :H].astype(inputs.dtype)[None]              # (1, B, H)
    return output, state


def _reference_gru(inputs, hidden, input_lengths, params):
    """Pure-JAX reference mirroring PyTorch packed-sequence GRU semantics."""
    B, T, D = inputs.shape
    H = params["w_hh"].shape[1]
    w_ih, w_hh = params["w_ih"], params["w_hh"]
    b_ih, b_hh = params["b_ih"], params["b_hh"]
    h = hidden[0]
    outs = []
    for t in range(T):
        x = inputs[:, t, :]
        gi = x @ w_ih.T + b_ih
        gh = h @ w_hh.T + b_hh
        r = jax.nn.sigmoid(gi[:, :H] + gh[:, :H])
        z = jax.nn.sigmoid(gi[:, H:2 * H] + gh[:, H:2 * H])
        n = jnp.tanh(gi[:, 2 * H:] + r * gh[:, 2 * H:])
        h_new = (1 - z) * n + z * h
        mask = (input_lengths > t)[:, None]
        h = jnp.where(mask, h_new, h)
        outs.append(jnp.where(mask, h_new, 0.0))
    return jnp.stack(outs, axis=1), h[None]


if __name__ == "__main__":
    # Config: n_channels=4, encoder_hidden=32, encoder_layers=1, dnn_layers=0,
    #         bidirectional=False (module defaults).
    B, T, D, H = 2, 8, 4, 32

    key = jax.random.PRNGKey(0)
    k1, k2, k3, k4, k5 = jax.random.split(key, 5)
    bound = 1.0 / jnp.sqrt(H)
    params = {
        "w_ih": jax.random.uniform(k1, (3 * H, D), jnp.float32, -bound, bound),
        "w_hh": jax.random.uniform(k2, (3 * H, H), jnp.float32, -bound, bound),
        "b_ih": jax.random.uniform(k3, (3 * H,), jnp.float32, -bound, bound),
        "b_hh": jax.random.uniform(k4, (3 * H,), jnp.float32, -bound, bound),
    }

    inputs = jax.random.normal(k5, (B, T, D), jnp.float32)
    hidden = jnp.zeros((1, B, H), jnp.float32)             # EncoderRNN.init_hidden
    input_lengths = jnp.array([8, 5], dtype=jnp.int32)     # sorted desc, like pack_padded

    prepared = prepare_encoder_params(params, H)           # one-time param prep
    output, state = encoder_rnn_forward(inputs, hidden, input_lengths, prepared)
    jax.block_until_ready((output, state))

    ref_out, ref_state = _reference_gru(inputs, hidden, input_lengths, params)
    assert jnp.allclose(output, ref_out, atol=1e-5), "output mismatch"
    assert jnp.allclose(state, ref_state, atol=1e-5), "state mismatch"

    print("KERNEL_OK")
</pallas_src>

<mosaic_0001>
module attributes {stable_mosaic.version = 11 : i64} {
  func.func @_encoder_gru_kernel(%arg0: memref<2x1xi32, #tpu.memory_space<vmem>>, %arg1: memref<16x4xf32, #tpu.memory_space<vmem>>, %arg2: memref<2x128xf32, #tpu.memory_space<vmem>>, %arg3: memref<4x384xf32, #tpu.memory_space<vmem>>, %arg4: memref<128x384xf32, #tpu.memory_space<vmem>>, %arg5: memref<1x384xf32, #tpu.memory_space<vmem>>, %arg6: memref<1x384xf32, #tpu.memory_space<vmem>>, %arg7: memref<2x1024xf32, #tpu.memory_space<vmem>>, %arg8: memref<2x128xf32, #tpu.memory_space<vmem>>) attributes {dimension_semantics = [], scalar_prefetch = 0 : i64, scratch_operands = 0 : i64, tpu.core_type = #tpu.core_type<tc>} {
    %c0 = arith.constant 0 : index
    %c0_0 = arith.constant 0 : index
    %0 = vector.load %arg1[%c0, %c0_0] : memref<16x4xf32, #tpu.memory_space<vmem>>, vector<16x4xf32>
    %c0_1 = arith.constant 0 : index
    %c0_2 = arith.constant 0 : index
    %1 = vector.load %arg3[%c0_1, %c0_2] : memref<4x384xf32, #tpu.memory_space<vmem>>, vector<4x384xf32>
    %cst = arith.constant dense<0.000000e+00> : vector<16x384xf32>
    %2 = tpu.matmul %0, %1, %cst {dimension_numbers = #tpu.dot_dimension_numbers<[1], [0], [0], [1], [0, 0, 1, 1], [], []>} : vector<16x4xf32>, vector<4x384xf32>, vector<16x384xf32> -> vector<16x384xf32>
    %c0_3 = arith.constant 0 : index
    %c0_4 = arith.constant 0 : index
    %3 = vector.load %arg5[%c0_3, %c0_4] : memref<1x384xf32, #tpu.memory_space<vmem>>, vector<1x384xf32>
    %4 = vector.broadcast %3 : vector<1x384xf32> to vector<16x384xf32>
    %5 = arith.addf %2, %4 : vector<16x384xf32>
    %c0_5 = arith.constant 0 : index
    %c0_6 = arith.constant 0 : index
    %6 = vector.load %arg4[%c0_5, %c0_6] : memref<128x384xf32, #tpu.memory_space<vmem>>, vector<128x384xf32>
    %c0_7 = arith.constant 0 : index
    %c0_8 = arith.constant 0 : index
    %7 = vector.load %arg6[%c0_7, %c0_8] : memref<1x384xf32, #tpu.memory_space<vmem>>, vector<1x384xf32>
    %c0_9 = arith.constant 0 : index
    %c0_10 = arith.constant 0 : index
    %8 = vector.load %arg0[%c0_9, %c0_10] : memref<2x1xi32, #tpu.memory_space<vmem>>, vector<2x1xi32>
    %c0_11 = arith.constant 0 : index
    %c0_12 = arith.constant 0 : index
    %9 = vector.load %arg2[%c0_11, %c0_12] : memref<2x128xf32, #tpu.memory_space<vmem>>, vector<2x128xf32>
    %10 = vector.extract_strided_slice %5 {offsets = [0, 0], sizes = [2, 384], strides = [1, 1]} : vector<16x384xf32> to vector<2x384xf32>
    %cst_13 = arith.constant dense<0.000000e+00> : vector<2x384xf32>
    %11 = tpu.matmul %9, %6, %cst_13 {dimension_numbers = #tpu.dot_dimension_numbers<[1], [0], [0], [1], [0, 0, 1, 1], [], []>} : vector<2x128xf32>, vector<128x384xf32>, vector<2x384xf32> -> vector<2x384xf32>
    %12 = vector.broadcast %7 : vector<1x384xf32> to vector<2x384xf32>
    %13 = arith.addf %11, %12 : vector<2x384xf32>
    %14 = vector.extract_strided_slice %10 {offsets = [0, 0], sizes = [2, 128], strides = [1, 1]} : vector<2x384xf32> to vector<2x128xf32>
    %15 = vector.extract_strided_slice %13 {offsets = [0, 0], sizes = [2, 128], strides = [1, 1]} : vector<2x384xf32> to vector<2x128xf32>
    %16 = arith.addf %14, %15 : vector<2x128xf32>
    %17 = vector.extract_strided_slice %10 {offsets = [0, 128], sizes = [2, 128], strides = [1, 1]} : vector<2x384xf32> to vector<2x128xf32>
    %18 = vector.extract_strided_slice %13 {offsets = [0, 128], sizes = [2, 128], strides = [1, 1]} : vector<2x384xf32> to vector<2x128xf32>
    %19 = arith.addf %17, %18 : vector<2x128xf32>
    %cst_14 = arith.constant 5.000000e-01 : f32
    %20 = vector.broadcast %cst_14 : f32 to vector<2x128xf32>
    %21 = arith.mulf %20, %16 : vector<2x128xf32>
    %22 = math.tanh %21 : vector<2x128xf32>
    %cst_15 = arith.constant 5.000000e-01 : f32
    %23 = vector.broadcast %cst_15 : f32 to vector<2x128xf32>
    %24 = arith.mulf %23, %22 : vector<2x128xf32>
    %cst_16 = arith.constant 5.000000e-01 : f32
    %25 = vector.broadcast %cst_16 : f32 to vector<2x128xf32>
    %26 = arith.addf %24, %25 : vector<2x128xf32>
    %cst_17 = arith.constant 5.000000e-01 : f32
    %27 = vector.broadcast %cst_17 : f32 to vector<2x128xf32>
    %28 = arith.mulf %27, %19 : vector<2x128xf32>
    %29 = math.tanh %28 : vector<2x128xf32>
    %cst_18 = arith.constant 5.000000e-01 : f32
    %30 = vector.broadcast %cst_18 : f32 to vector<2x128xf32>
    %31 = arith.mulf %30, %29 : vector<2x128xf32>
    %cst_19 = arith.constant 5.000000e-01 : f32
    %32 = vector.broadcast %cst_19 : f32 to vector<2x128xf32>
    %33 = arith.addf %31, %32 : vector<2x128xf32>
    %34 = vector.extract_strided_slice %10 {offsets = [0, 256], sizes = [2, 128], strides = [1, 1]} : vector<2x384xf32> to vector<2x128xf32>
    %35 = vector.extract_strided_slice %13 {offsets = [0, 256], sizes = [2, 128], strides = [1, 1]} : vector<2x384xf32> to vector<2x128xf32>
    %36 = arith.mulf %26, %35 : vector<2x128xf32>
    %37 = arith.addf %34, %36 : vector<2x128xf32>
    %38 = math.tanh %37 : vector<2x128xf32>
    %cst_20 = arith.constant 1.000000e+00 : f32
    %39 = vector.broadcast %cst_20 : f32 to vector<2x128xf32>
    %40 = arith.subf %39, %33 : vector<2x128xf32>
    %41 = arith.mulf %40, %38 : vector<2x128xf32>
    %42 = arith.mulf %33, %9 : vector<2x128xf32>
    %43 = arith.addf %41, %42 : vector<2x128xf32>
    %c0_i32 = arith.constant 0 : i32
    %44 = vector.broadcast %c0_i32 : i32 to vector<2x1xi32>
    %45 = arith.cmpi sgt, %8, %44 : vector<2x1xi32>
    %46 = vector.shape_cast %45 : vector<2x1xi1> to vector<2x1xi1>
    %47 = vector.broadcast %46 : vector<2x1xi1> to vector<2x128xi1>
    %48 = arith.select %47, %43, %9 : vector<2x128xi1>, vector<2x128xf32>
    %cst_21 = arith.constant 0.000000e+00 : f32
    %49 = vector.shape_cast %45 : vector<2x1xi1> to vector<2x1xi1>
    %50 = vector.broadcast %49 : vector<2x1xi1> to vector<2x128xi1>
    %51 = vector.broadcast %cst_21 : f32 to vector<2x128xf32>
    %52 = arith.select %50, %43, %51 : vector<2x128xi1>, vector<2x128xf32>
    %53 = vector.extract_strided_slice %5 {offsets = [2, 0], sizes = [2, 384], strides = [1, 1]} : vector<16x384xf32> to vector<2x384xf32>
    %cst_22 = arith.constant dense<0.000000e+00> : vector<2x384xf32>
    %54 = tpu.matmul %48, %6, %cst_22 {dimension_numbers = #tpu.dot_dimension_numbers<[1], [0], [0], [1], [0, 0, 1, 1], [], []>} : vector<2x128xf32>, vector<128x384xf32>, vector<2x384xf32> -> vector<2x384xf32>
    %55 = vector.broadcast %7 : vector<1x384xf32> to vector<2x384xf32>
    %56 = arith.addf %54, %55 : vector<2x384xf32>
    %57 = vector.extract_strided_slice %53 {offsets = [0, 0], sizes = [2, 128], strides = [1, 1]} : vector<2x384xf32> to vector<2x128xf32>
    %58 = vector.extract_strided_slice %56 {offsets = [0, 0], sizes = [2, 128], strides = [1, 1]} : vector<2x384xf32> to vector<2x128xf32>
    %59 = arith.addf %57, %58 : vector<2x128xf32>
    %60 = vector.extract_strided_slice %53 {offsets = [0, 128], sizes = [2, 128], strides = [1, 1]} : vector<2x384xf32> to vector<2x128xf32>
    %61 = vector.extract_strided_slice %56 {offsets = [0, 128], sizes = [2, 128], strides = [1, 1]} : vector<2x384xf32> to vector<2x128xf32>
    %62 = arith.addf %60, %61 : vector<2x128xf32>
    %cst_23 = arith.constant 5.000000e-01 : f32
    %63 = vector.broadcast %cst_23 : f32 to vector<2x128xf32>
    %64 = arith.mulf %63, %59 : vector<2x128xf32>
    %65 = math.tanh %64 : vector<2x128xf32>
    %cst_24 = arith.constant 5.000000e-01 : f32
    %66 = vector.broadcast %cst_24 : f32 to vector<2x128xf32>
    %67 = arith.mulf %66, %65 : vector<2x128xf32>
    %cst_25 = arith.constant 5.000000e-01 : f32
    %68 = vector.broadcast %cst_25 : f32 to vector<2x128xf32>
    %69 = arith.addf %67, %68 : vector<2x128xf32>
    %cst_26 = arith.constant 5.000000e-01 : f32
    %70 = vector.broadcast %cst_26 : f32 to vector<2x128xf32>
    %71 = arith.mulf %70, %62 : vector<2x128xf32>
    %72 = math.tanh %71 : vector<2x128xf32>
    %cst_27 = arith.constant 5.000000e-01 : f32
    %73 = vector.broadcast %cst_27 : f32 to vector<2x128xf32>
    %74 = arith.mulf %73, %72 : vector<2x128xf32>
    %cst_28 = arith.constant 5.000000e-01 : f32
    %75 = vector.broadcast %cst_28 : f32 to vector<2x128xf32>
    %76 = arith.addf %74, %75 : vector<2x128xf32>
    %77 = vector.extract_strided_slice %53 {offsets = [0, 256], sizes = [2, 128], strides = [1, 1]} : vector<2x384xf32> to vector<2x128xf32>
    %78 = vector.extract_strided_slice %56 {offsets = [0, 256], sizes = [2, 128], strides = [1, 1]} : vector<2x384xf32> to vector<2x128xf32>
    %79 = arith.mulf %69, %78 : vector<2x128xf32>
    %80 = arith.addf %77, %79 : vector<2x128xf32>
    %81 = math.tanh %80 : vector<2x128xf32>
    %cst_29 = arith.constant 1.000000e+00 : f32
    %82 = vector.broadcast %cst_29 : f32 to vector<2x128xf32>
    %83 = arith.subf %82, %76 : vector<2x128xf32>
    %84 = arith.mulf %83, %81 : vector<2x128xf32>
    %85 = arith.mulf %76, %48 : vector<2x128xf32>
    %86 = arith.addf %84, %85 : vector<2x128xf32>
    %c1_i32 = arith.constant 1 : i32
    %87 = vector.broadcast %c1_i32 : i32 to vector<2x1xi32>
    %88 = arith.cmpi sgt, %8, %87 : vector<2x1xi32>
    %89 = vector.shape_cast %88 : vector<2x1xi1> to vector<2x1xi1>
    %90 = vector.broadcast %89 : vector<2x1xi1> to vector<2x128xi1>
    %91 = arith.select %90, %86, %48 : vector<2x128xi1>, vector<2x128xf32>
    %cst_30 = arith.constant 0.000000e+00 : f32
    %92 = vector.shape_cast %88 : vector<2x1xi1> to vector<2x1xi1>
    %93 = vector.broadcast %92 : vector<2x1xi1> to vector<2x128xi1>
    %94 = vector.broadcast %cst_30 : f32 to vector<2x128xf32>
    %95 = arith.select %93, %86, %94 : vector<2x128xi1>, vector<2x128xf32>
    %96 = vector.extract_strided_slice %5 {offsets = [4, 0], sizes = [2, 384], strides = [1, 1]} : vector<16x384xf32> to vector<2x384xf32>
    %cst_31 = arith.constant dense<0.000000e+00> : vector<2x384xf32>
    %97 = tpu.matmul %91, %6, %cst_31 {dimension_numbers = #tpu.dot_dimension_numbers<[1], [0], [0], [1], [0, 0, 1, 1], [], []>} : vector<2x128xf32>, vector<128x384xf32>, vector<2x384xf32> -> vector<2x384xf32>
    %98 = vector.broadcast %7 : vector<1x384xf32> to vector<2x384xf32>
    %99 = arith.addf %97, %98 : vector<2x384xf32>
    %100 = vector.extract_strided_slice %96 {offsets = [0, 0], sizes = [2, 128], strides = [1, 1]} : vector<2x384xf32> to vector<2x128xf32>
    %101 = vector.extract_strided_slice %99 {offsets = [0, 0], sizes = [2, 128], strides = [1, 1]} : vector<2x384xf32> to vector<2x128xf32>
    %102 = arith.addf %100, %101 : vector<2x128xf32>
    %103 = vector.extract_strided_slice %96 {offsets = [0, 128], sizes = [2, 128], strides = [1, 1]} : vector<2x384xf32> to vector<2x128xf32>
    %104 = vector.extract_strided_slice %99 {offsets = [0, 128], sizes = [2, 128], strides = [1, 1]} : vector<2x384xf32> to vector<2x128xf32>
    %105 = arith.addf %103, %104 : vector<2x128xf32>
    %cst_32 = arith.constant 5.000000e-01 : f32
    %106 = vector.broadcast %cst_32 : f32 to vector<2x128xf32>
    %107 = arith.mulf %106, %102 : vector<2x128xf32>
    %108 = math.tanh %107 : vector<2x128xf32>
    %cst_33 = arith.constant 5.000000e-01 : f32
    %109 = vector.broadcast %cst_33 : f32 to vector<2x128xf32>
    %110 = arith.mulf %109, %108 : vector<2x128xf32>
    %cst_34 = arith.constant 5.000000e-01 : f32
    %111 = vector.broadcast %cst_34 : f32 to vector<2x128xf32>
    %112 = arith.addf %110, %111 : vector<2x128xf32>
    %cst_35 = arith.constant 5.000000e-01 : f32
    %113 = vector.broadcast %cst_35 : f32 to vector<2x128xf32>
    %114 = arith.mulf %113, %105 : vector<2x128xf32>
    %115 = math.tanh %114 : vector<2x128xf32>
    %cst_36 = arith.constant 5.000000e-01 : f32
    %116 = vector.broadcast %cst_36 : f32 to vector<2x128xf32>
    %117 = arith.mulf %116, %115 : vector<2x128xf32>
    %cst_37 = arith.constant 5.000000e-01 : f32
    %118 = vector.broadcast %cst_37 : f32 to vector<2x128xf32>
    %119 = arith.addf %117, %118 : vector<2x128xf32>
    %120 = vector.extract_strided_slice %96 {offsets = [0, 256], sizes = [2, 128], strides = [1, 1]} : vector<2x384xf32> to vector<2x128xf32>
    %121 = vector.extract_strided_slice %99 {offsets = [0, 256], sizes = [2, 128], strides = [1, 1]} : vector<2x384xf32> to vector<2x128xf32>
    %122 = arith.mulf %112, %121 : vector<2x128xf32>
    %123 = arith.addf %120, %122 : vector<2x128xf32>
    %124 = math.tanh %123 : vector<2x128xf32>
    %cst_38 = arith.constant 1.000000e+00 : f32
    %125 = vector.broadcast %cst_38 : f32 to vector<2x128xf32>
    %126 = arith.subf %125, %119 : vector<2x128xf32>
    %127 = arith.mulf %126, %124 : vector<2x128xf32>
    %128 = arith.mulf %119, %91 : vector<2x128xf32>
    %129 = arith.addf %127, %128 : vector<2x128xf32>
    %c2_i32 = arith.constant 2 : i32
    %130 = vector.broadcast %c2_i32 : i32 to vector<2x1xi32>
    %131 = arith.cmpi sgt, %8, %130 : vector<2x1xi32>
    %132 = vector.shape_cast %131 : vector<2x1xi1> to vector<2x1xi1>
    %133 = vector.broadcast %132 : vector<2x1xi1> to vector<2x128xi1>
    %134 = arith.select %133, %129, %91 : vector<2x128xi1>, vector<2x128xf32>
    %cst_39 = arith.constant 0.000000e+00 : f32
    %135 = vector.shape_cast %131 : vector<2x1xi1> to vector<2x1xi1>
    %136 = vector.broadcast %135 : vector<2x1xi1> to vector<2x128xi1>
    %137 = vector.broadcast %cst_39 : f32 to vector<2x128xf32>
    %138 = arith.select %136, %129, %137 : vector<2x128xi1>, vector<2x128xf32>
    %139 = vector.extract_strided_slice %5 {offsets = [6, 0], sizes = [2, 384], strides = [1, 1]} : vector<16x384xf32> to vector<2x384xf32>
    %cst_40 = arith.constant dense<0.000000e+00> : vector<2x384xf32>
    %140 = tpu.matmul %134, %6, %cst_40 {dimension_numbers = #tpu.dot_dimension_numbers<[1], [0], [0], [1], [0, 0, 1, 1], [], []>} : vector<2x128xf32>, vector<128x384xf32>, vector<2x384xf32> -> vector<2x384xf32>
    %141 = vector.broadcast %7 : vector<1x384xf32> to vector<2x384xf32>
    %142 = arith.addf %140, %141 : vector<2x384xf32>
    %143 = vector.extract_strided_slice %139 {offsets = [0, 0], sizes = [2, 128], strides = [1, 1]} : vector<2x384xf32> to vector<2x128xf32>
    %144 = vector.extract_strided_slice %142 {offsets = [0, 0], sizes = [2, 128], strides = [1, 1]} : vector<2x384xf32> to vector<2x128xf32>
    %145 = arith.addf %143, %144 : vector<2x128xf32>
    %146 = vector.extract_strided_slice %139 {offsets = [0, 128], sizes = [2, 128], strides = [1, 1]} : vector<2x384xf32> to vector<2x128xf32>
    %147 = vector.extract_strided_slice %142 {offsets = [0, 128], sizes = [2, 128], strides = [1, 1]} : vector<2x384xf32> to vector<2x128xf32>
    %148 = arith.addf %146, %147 : vector<2x128xf32>
    %cst_41 = arith.constant 5.000000e-01 : f32
    %149 = vector.broadcast %cst_41 : f32 to vector<2x128xf32>
    %150 = arith.mulf %149, %145 : vector<2x128xf32>
    %151 = math.tanh %150 : vector<2x128xf32>
    %cst_42 = arith.constant 5.000000e-01 : f32
    %152 = vector.broadcast %cst_42 : f32 to vector<2x128xf32>
    %153 = arith.mulf %152, %151 : vector<2x128xf32>
    %cst_43 = arith.constant 5.000000e-01 : f32
    %154 = vector.broadcast %cst_43 : f32 to vector<2x128xf32>
    %155 = arith.addf %153, %154 : vector<2x128xf32>
    %cst_44 = arith.constant 5.000000e-01 : f32
    %156 = vector.broadcast %cst_44 : f32 to vector<2x128xf32>
    %157 = arith.mulf %156, %148 : vector<2x128xf32>
    %158 = math.tanh %157 : vector<2x128xf32>
    %cst_45 = arith.constant 5.000000e-01 : f32
    %159 = vector.broadcast %cst_45 : f32 to vector<2x128xf32>
    %160 = arith.mulf %159, %158 : vector<2x128xf32>
    %cst_46 = arith.constant 5.000000e-01 : f32
    %161 = vector.broadcast %cst_46 : f32 to vector<2x128xf32>
    %162 = arith.addf %160, %161 : vector<2x128xf32>
    %163 = vector.extract_strided_slice %139 {offsets = [0, 256], sizes = [2, 128], strides = [1, 1]} : vector<2x384xf32> to vector<2x128xf32>
    %164 = vector.extract_strided_slice %142 {offsets = [0, 256], sizes = [2, 128], strides = [1, 1]} : vector<2x384xf32> to vector<2x128xf32>
    %165 = arith.mulf %155, %164 : vector<2x128xf32>
    %166 = arith.addf %163, %165 : vector<2x128xf32>
    %167 = math.tanh %166 : vector<2x128xf32>
    %cst_47 = arith.constant 1.000000e+00 : f32
    %168 = vector.broadcast %cst_47 : f32 to vector<2x128xf32>
    %169 = arith.subf %168, %162 : vector<2x128xf32>
    %170 = arith.mulf %169, %167 : vector<2x128xf32>
    %171 = arith.mulf %162, %134 : vector<2x128xf32>
    %172 = arith.addf %170, %171 : vector<2x128xf32>
    %c3_i32 = arith.constant 3 : i32
    %173 = vector.broadcast %c3_i32 : i32 to vector<2x1xi32>
    %174 = arith.cmpi sgt, %8, %173 : vector<2x1xi32>
    %175 = vector.shape_cast %174 : vector<2x1xi1> to vector<2x1xi1>
    %176 = vector.broadcast %175 : vector<2x1xi1> to vector<2x128xi1>
    %177 = arith.select %176, %172, %134 : vector<2x128xi1>, vector<2x128xf32>
    %cst_48 = arith.constant 0.000000e+00 : f32
    %178 = vector.shape_cast %174 : vector<2x1xi1> to vector<2x1xi1>
    %179 = vector.broadcast %178 : vector<2x1xi1> to vector<2x128xi1>
    %180 = vector.broadcast %cst_48 : f32 to vector<2x128xf32>
    %181 = arith.select %179, %172, %180 : vector<2x128xi1>, vector<2x128xf32>
    %182 = vector.extract_strided_slice %5 {offsets = [8, 0], sizes = [2, 384], strides = [1, 1]} : vector<16x384xf32> to vector<2x384xf32>
    %cst_49 = arith.constant dense<0.000000e+00> : vector<2x384xf32>
    %183 = tpu.matmul %177, %6, %cst_49 {dimension_numbers = #tpu.dot_dimension_numbers<[1], [0], [0], [1], [0, 0, 1, 1], [], []>} : vector<2x128xf32>, vector<128x384xf32>, vector<2x384xf32> -> vector<2x384xf32>
    %184 = vector.broadcast %7 : vector<1x384xf32> to vector<2x384xf32>
    %185 = arith.addf %183, %184 : vector<2x384xf32>
    %186 = vector.extract_strided_slice %182 {offsets = [0, 0], sizes = [2, 128], strides = [1, 1]} : vector<2x384xf32> to vector<2x128xf32>
    %187 = vector.extract_strided_slice %185 {offsets = [0, 0], sizes = [2, 128], strides = [1, 1]} : vector<2x384xf32> to vector<2x128xf32>
    %188 = arith.addf %186, %187 : vector<2x128xf32>
    %189 = vector.extract_strided_slice %182 {offsets = [0, 128], sizes = [2, 128], strides = [1, 1]} : vector<2x384xf32> to vector<2x128xf32>
    %190 = vector.extract_strided_slice %185 {offsets = [0, 128], sizes = [2, 128], strides = [1, 1]} : vector<2x384xf32> to vector<2x128xf32>
    %191 = arith.addf %189, %190 : vector<2x128xf32>
    %cst_50 = arith.constant 5.000000e-01 : f32
    %192 = vector.broadcast %cst_50 : f32 to vector<2x128xf32>
    %193 = arith.mulf %192, %188 : vector<2x128xf32>
    %194 = math.tanh %193 : vector<2x128xf32>
    %cst_51 = arith.constant 5.000000e-01 : f32
    %195 = vector.broadcast %cst_51 : f32 to vector<2x128xf32>
    %196 = arith.mulf %195, %194 : vector<2x128xf32>
    %cst_52 = arith.constant 5.000000e-01 : f32
    %197 = vector.broadcast %cst_52 : f32 to vector<2x128xf32>
    %198 = arith.addf %196, %197 : vector<2x128xf32>
    %cst_53 = arith.constant 5.000000e-01 : f32
    %199 = vector.broadcast %cst_53 : f32 to vector<2x128xf32>
    %200 = arith.mulf %199, %191 : vector<2x128xf32>
    %201 = math.tanh %200 : vector<2x128xf32>
    %cst_54 = arith.constant 5.000000e-01 : f32
    %202 = vector.broadcast %cst_54 : f32 to vector<2x128xf32>
    %203 = arith.mulf %202, %201 : vector<2x128xf32>
    %cst_55 = arith.constant 5.000000e-01 : f32
    %204 = vector.broadcast %cst_55 : f32 to vector<2x128xf32>
    %205 = arith.addf %203, %204 : vector<2x128xf32>
    %206 = vector.extract_strided_slice %182 {offsets = [0, 256], sizes = [2, 128], strides = [1, 1]} : vector<2x384xf32> to vector<2x128xf32>
    %207 = vector.extract_strided_slice %185 {offsets = [0, 256], sizes = [2, 128], strides = [1, 1]} : vector<2x384xf32> to vector<2x128xf32>
    %208 = arith.mulf %198, %207 : vector<2x128xf32>
    %209 = arith.addf %206, %208 : vector<2x128xf32>
    %210 = math.tanh %209 : vector<2x128xf32>
    %cst_56 = arith.constant 1.000000e+00 : f32
    %211 = vector.broadcast %cst_56 : f32 to vector<2x128xf32>
    %212 = arith.subf %211, %205 : vector<2x128xf32>
    %213 = arith.mulf %212, %210 : vector<2x128xf32>
    %214 = arith.mulf %205, %177 : vector<2x128xf32>
    %215 = arith.addf %213, %214 : vector<2x128xf32>
    %c4_i32 = arith.constant 4 : i32
    %216 = vector.broadcast %c4_i32 : i32 to vector<2x1xi32>
    %217 = arith.cmpi sgt, %8, %216 : vector<2x1xi32>
    %218 = vector.shape_cast %217 : vector<2x1xi1> to vector<2x1xi1>
    %219 = vector.broadcast %218 : vector<2x1xi1> to vector<2x128xi1>
    %220 = arith.select %219, %215, %177 : vector<2x128xi1>, vector<2x128xf32>
    %cst_57 = arith.constant 0.000000e+00 : f32
    %221 = vector.shape_cast %217 : vector<2x1xi1> to vector<2x1xi1>
    %222 = vector.broadcast %221 : vector<2x1xi1> to vector<2x128xi1>
    %223 = vector.broadcast %cst_57 : f32 to vector<2x128xf32>
    %224 = arith.select %222, %215, %223 : vector<2x128xi1>, vector<2x128xf32>
    %225 = vector.extract_strided_slice %5 {offsets = [10, 0], sizes = [2, 384], strides = [1, 1]} : vector<16x384xf32> to vector<2x384xf32>
    %cst_58 = arith.constant dense<0.000000e+00> : vector<2x384xf32>
    %226 = tpu.matmul %220, %6, %cst_58 {dimension_numbers = #tpu.dot_dimension_numbers<[1], [0], [0], [1], [0, 0, 1, 1], [], []>} : vector<2x128xf32>, vector<128x384xf32>, vector<2x384xf32> -> vector<2x384xf32>
    %227 = vector.broadcast %7 : vector<1x384xf32> to vector<2x384xf32>
    %228 = arith.addf %226, %227 : vector<2x384xf32>
    %229 = vector.extract_strided_slice %225 {offsets = [0, 0], sizes = [2, 128], strides = [1, 1]} : vector<2x384xf32> to vector<2x128xf32>
    %230 = vector.extract_strided_slice %228 {offsets = [0, 0], sizes = [2, 128], strides = [1, 1]} : vector<2x384xf32> to vector<2x128xf32>
    %231 = arith.addf %229, %230 : vector<2x128xf32>
    %232 = vector.extract_strided_slice %225 {offsets = [0, 128], sizes = [2, 128], strides = [1, 1]} : vector<2x384xf32> to vector<2x128xf32>
    %233 = vector.extract_strided_slice %228 {offsets = [0, 128], sizes = [2, 128], strides = [1, 1]} : vector<2x384xf32> to vector<2x128xf32>
    %234 = arith.addf %232, %233 : vector<2x128xf32>
    %cst_59 = arith.constant 5.000000e-01 : f32
    %235 = vector.broadcast %cst_59 : f32 to vector<2x128xf32>
    %236 = arith.mulf %235, %231 : vector<2x128xf32>
    %237 = math.tanh %236 : vector<2x128xf32>
    %cst_60 = arith.constant 5.000000e-01 : f32
    %238 = vector.broadcast %cst_60 : f32 to vector<2x128xf32>
    %239 = arith.mulf %238, %237 : vector<2x128xf32>
    %cst_61 = arith.constant 5.000000e-01 : f32
    %240 = vector.broadcast %cst_61 : f32 to vector<2x128xf32>
    %241 = arith.addf %239, %240 : vector<2x128xf32>
    %cst_62 = arith.constant 5.000000e-01 : f32
    %242 = vector.broadcast %cst_62 : f32 to vector<2x128xf32>
    %243 = arith.mulf %242, %234 : vector<2x128xf32>
    %244 = math.tanh %243 : vector<2x128xf32>
    %cst_63 = arith.constant 5.000000e-01 : f32
    %245 = vector.broadcast %cst_63 : f32 to vector<2x128xf32>
    %246 = arith.mulf %245, %244 : vector<2x128xf32>
    %cst_64 = arith.constant 5.000000e-01 : f32
    %247 = vector.broadcast %cst_64 : f32 to vector<2x128xf32>
    %248 = arith.addf %246, %247 : vector<2x128xf32>
    %249 = vector.extract_strided_slice %225 {offsets = [0, 256], sizes = [2, 128], strides = [1, 1]} : vector<2x384xf32> to vector<2x128xf32>
    %250 = vector.extract_strided_slice %228 {offsets = [0, 256], sizes = [2, 128], strides = [1, 1]} : vector<2x384xf32> to vector<2x128xf32>
    %251 = arith.mulf %241, %250 : vector<2x128xf32>
    %252 = arith.addf %249, %251 : vector<2x128xf32>
    %253 = math.tanh %252 : vector<2x128xf32>
    %cst_65 = arith.constant 1.000000e+00 : f32
    %254 = vector.broadcast %cst_65 : f32 to vector<2x128xf32>
    %255 = arith.subf %254, %248 : vector<2x128xf32>
    %256 = arith.mulf %255, %253 : vector<2x128xf32>
    %257 = arith.mulf %248, %220 : vector<2x128xf32>
    %258 = arith.addf %256, %257 : vector<2x128xf32>
    %c5_i32 = arith.constant 5 : i32
    %259 = vector.broadcast %c5_i32 : i32 to vector<2x1xi32>
    %260 = arith.cmpi sgt, %8, %259 : vector<2x1xi32>
    %261 = vector.shape_cast %260 : vector<2x1xi1> to vector<2x1xi1>
    %262 = vector.broadcast %261 : vector<2x1xi1> to vector<2x128xi1>
    %263 = arith.select %262, %258, %220 : vector<2x128xi1>, vector<2x128xf32>
    %cst_66 = arith.constant 0.000000e+00 : f32
    %264 = vector.shape_cast %260 : vector<2x1xi1> to vector<2x1xi1>
    %265 = vector.broadcast %264 : vector<2x1xi1> to vector<2x128xi1>
    %266 = vector.broadcast %cst_66 : f32 to vector<2x128xf32>
    %267 = arith.select %265, %258, %266 : vector<2x128xi1>, vector<2x128xf32>
    %268 = vector.extract_strided_slice %5 {offsets = [12, 0], sizes = [2, 384], strides = [1, 1]} : vector<16x384xf32> to vector<2x384xf32>
    %cst_67 = arith.constant dense<0.000000e+00> : vector<2x384xf32>
    %269 = tpu.matmul %263, %6, %cst_67 {dimension_numbers = #tpu.dot_dimension_numbers<[1], [0], [0], [1], [0, 0, 1, 1], [], []>} : vector<2x128xf32>, vector<128x384xf32>, vector<2x384xf32> -> vector<2x384xf32>
    %270 = vector.broadcast %7 : vector<1x384xf32> to vector<2x384xf32>
    %271 = arith.addf %269, %270 : vector<2x384xf32>
    %272 = vector.extract_strided_slice %268 {offsets = [0, 0], sizes = [2, 128], strides = [1, 1]} : vector<2x384xf32> to vector<2x128xf32>
    %273 = vector.extract_strided_slice %271 {offsets = [0, 0], sizes = [2, 128], strides = [1, 1]} : vector<2x384xf32> to vector<2x128xf32>
    %274 = arith.addf %272, %273 : vector<2x128xf32>
    %275 = vector.extract_strided_slice %268 {offsets = [0, 128], sizes = [2, 128], strides = [1, 1]} : vector<2x384xf32> to vector<2x128xf32>
    %276 = vector.extract_strided_slice %271 {offsets = [0, 128], sizes = [2, 128], strides = [1, 1]} : vector<2x384xf32> to vector<2x128xf32>
    %277 = arith.addf %275, %276 : vector<2x128xf32>
    %cst_68 = arith.constant 5.000000e-01 : f32
    %278 = vector.broadcast %cst_68 : f32 to vector<2x128xf32>
    %279 = arith.mulf %278, %274 : vector<2x128xf32>
    %280 = math.tanh %279 : vector<2x128xf32>
    %cst_69 = arith.constant 5.000000e-01 : f32
    %281 = vector.broadcast %cst_69 : f32 to vector<2x128xf32>
    %282 = arith.mulf %281, %280 : vector<2x128xf32>
    %cst_70 = arith.constant 5.000000e-01 : f32
    %283 = vector.broadcast %cst_70 : f32 to vector<2x128xf32>
    %284 = arith.addf %282, %283 : vector<2x128xf32>
    %cst_71 = arith.constant 5.000000e-01 : f32
    %285 = vector.broadcast %cst_71 : f32 to vector<2x128xf32>
    %286 = arith.mulf %285, %277 : vector<2x128xf32>
    %287 = math.tanh %286 : vector<2x128xf32>
    %cst_72 = arith.constant 5.000000e-01 : f32
    %288 = vector.broadcast %cst_72 : f32 to vector<2x128xf32>
    %289 = arith.mulf %288, %287 : vector<2x128xf32>
    %cst_73 = arith.constant 5.000000e-01 : f32
    %290 = vector.broadcast %cst_73 : f32 to vector<2x128xf32>
    %291 = arith.addf %289, %290 : vector<2x128xf32>
    %292 = vector.extract_strided_slice %268 {offsets = [0, 256], sizes = [2, 128], strides = [1, 1]} : vector<2x384xf32> to vector<2x128xf32>
    %293 = vector.extract_strided_slice %271 {offsets = [0, 256], sizes = [2, 128], strides = [1, 1]} : vector<2x384xf32> to vector<2x128xf32>
    %294 = arith.mulf %284, %293 : vector<2x128xf32>
    %295 = arith.addf %292, %294 : vector<2x128xf32>
    %296 = math.tanh %295 : vector<2x128xf32>
    %cst_74 = arith.constant 1.000000e+00 : f32
    %297 = vector.broadcast %cst_74 : f32 to vector<2x128xf32>
    %298 = arith.subf %297, %291 : vector<2x128xf32>
    %299 = arith.mulf %298, %296 : vector<2x128xf32>
    %300 = arith.mulf %291, %263 : vector<2x128xf32>
    %301 = arith.addf %299, %300 : vector<2x128xf32>
    %c6_i32 = arith.constant 6 : i32
    %302 = vector.broadcast %c6_i32 : i32 to vector<2x1xi32>
    %303 = arith.cmpi sgt, %8, %302 : vector<2x1xi32>
    %304 = vector.shape_cast %303 : vector<2x1xi1> to vector<2x1xi1>
    %305 = vector.broadcast %304 : vector<2x1xi1> to vector<2x128xi1>
    %306 = arith.select %305, %301, %263 : vector<2x128xi1>, vector<2x128xf32>
    %cst_75 = arith.constant 0.000000e+00 : f32
    %307 = vector.shape_cast %303 : vector<2x1xi1> to vector<2x1xi1>
    %308 = vector.broadcast %307 : vector<2x1xi1> to vector<2x128xi1>
    %309 = vector.broadcast %cst_75 : f32 to vector<2x128xf32>
    %310 = arith.select %308, %301, %309 : vector<2x128xi1>, vector<2x128xf32>
    %311 = vector.extract_strided_slice %5 {offsets = [14, 0], sizes = [2, 384], strides = [1, 1]} : vector<16x384xf32> to vector<2x384xf32>
    %cst_76 = arith.constant dense<0.000000e+00> : vector<2x384xf32>
    %312 = tpu.matmul %306, %6, %cst_76 {dimension_numbers = #tpu.dot_dimension_numbers<[1], [0], [0], [1], [0, 0, 1, 1], [], []>} : vector<2x128xf32>, vector<128x384xf32>, vector<2x384xf32> -> vector<2x384xf32>
    %313 = vector.broadcast %7 : vector<1x384xf32> to vector<2x384xf32>
    %314 = arith.addf %312, %313 : vector<2x384xf32>
    %315 = vector.extract_strided_slice %311 {offsets = [0, 0], sizes = [2, 128], strides = [1, 1]} : vector<2x384xf32> to vector<2x128xf32>
    %316 = vector.extract_strided_slice %314 {offsets = [0, 0], sizes = [2, 128], strides = [1, 1]} : vector<2x384xf32> to vector<2x128xf32>
    %317 = arith.addf %315, %316 : vector<2x128xf32>
    %318 = vector.extract_strided_slice %311 {offsets = [0, 128], sizes = [2, 128], strides = [1, 1]} : vector<2x384xf32> to vector<2x128xf32>
    %319 = vector.extract_strided_slice %314 {offsets = [0, 128], sizes = [2, 128], strides = [1, 1]} : vector<2x384xf32> to vector<2x128xf32>
    %320 = arith.addf %318, %319 : vector<2x128xf32>
    %cst_77 = arith.constant 5.000000e-01 : f32
    %321 = vector.broadcast %cst_77 : f32 to vector<2x128xf32>
    %322 = arith.mulf %321, %317 : vector<2x128xf32>
    %323 = math.tanh %322 : vector<2x128xf32>
    %cst_78 = arith.constant 5.000000e-01 : f32
    %324 = vector.broadcast %cst_78 : f32 to vector<2x128xf32>
    %325 = arith.mulf %324, %323 : vector<2x128xf32>
    %cst_79 = arith.constant 5.000000e-01 : f32
    %326 = vector.broadcast %cst_79 : f32 to vector<2x128xf32>
    %327 = arith.addf %325, %326 : vector<2x128xf32>
    %cst_80 = arith.constant 5.000000e-01 : f32
    %328 = vector.broadcast %cst_80 : f32 to vector<2x128xf32>
    %329 = arith.mulf %328, %320 : vector<2x128xf32>
    %330 = math.tanh %329 : vector<2x128xf32>
    %cst_81 = arith.constant 5.000000e-01 : f32
    %331 = vector.broadcast %cst_81 : f32 to vector<2x128xf32>
    %332 = arith.mulf %331, %330 : vector<2x128xf32>
    %cst_82 = arith.constant 5.000000e-01 : f32
    %333 = vector.broadcast %cst_82 : f32 to vector<2x128xf32>
    %334 = arith.addf %332, %333 : vector<2x128xf32>
    %335 = vector.extract_strided_slice %311 {offsets = [0, 256], sizes = [2, 128], strides = [1, 1]} : vector<2x384xf32> to vector<2x128xf32>
    %336 = vector.extract_strided_slice %314 {offsets = [0, 256], sizes = [2, 128], strides = [1, 1]} : vector<2x384xf32> to vector<2x128xf32>
    %337 = arith.mulf %327, %336 : vector<2x128xf32>
    %338 = arith.addf %335, %337 : vector<2x128xf32>
    %339 = math.tanh %338 : vector<2x128xf32>
    %cst_83 = arith.constant 1.000000e+00 : f32
    %340 = vector.broadcast %cst_83 : f32 to vector<2x128xf32>
    %341 = arith.subf %340, %334 : vector<2x128xf32>
    %342 = arith.mulf %341, %339 : vector<2x128xf32>
    %343 = arith.mulf %334, %306 : vector<2x128xf32>
    %344 = arith.addf %342, %343 : vector<2x128xf32>
    %c7_i32 = arith.constant 7 : i32
    %345 = vector.broadcast %c7_i32 : i32 to vector<2x1xi32>
    %346 = arith.cmpi sgt, %8, %345 : vector<2x1xi32>
    %347 = vector.shape_cast %346 : vector<2x1xi1> to vector<2x1xi1>
    %348 = vector.broadcast %347 : vector<2x1xi1> to vector<2x128xi1>
    %349 = arith.select %348, %344, %306 : vector<2x128xi1>, vector<2x128xf32>
    %cst_84 = arith.constant 0.000000e+00 : f32
    %350 = vector.shape_cast %346 : vector<2x1xi1> to vector<2x1xi1>
    %351 = vector.broadcast %350 : vector<2x1xi1> to vector<2x128xi1>
    %352 = vector.broadcast %cst_84 : f32 to vector<2x128xf32>
    %353 = arith.select %351, %344, %352 : vector<2x128xi1>, vector<2x128xf32>
    %354 = tpu.concatenate %52, %95, %138, %181, %224, %267, %310, %353 in 1 : vector<2x128xf32>, vector<2x128xf32>, vector<2x128xf32>, vector<2x128xf32>, vector<2x128xf32>, vector<2x128xf32>, vector<2x128xf32>, vector<2x128xf32> -> vector<2x1024xf32>
    %c0_85 = arith.constant 0 : index
    %c0_86 = arith.constant 0 : index
    %355 = vector.load %arg7[%c0_85, %c0_86] : memref<2x1024xf32, #tpu.memory_space<vmem>>, vector<2x1024xf32>
    tpu.vector_store %arg7[%c0_85, %c0_86], %354 {strides = array<i32>} : memref<2x1024xf32, #tpu.memory_space<vmem>>, vector<2x1024xf32>,
    %c0_87 = arith.constant 0 : index
    %c0_88 = arith.constant 0 : index
    %356 = vector.load %arg8[%c0_87, %c0_88] : memref<2x128xf32, #tpu.memory_space<vmem>>, vector<2x128xf32>
    tpu.vector_store %arg8[%c0_87, %c0_88], %349 {strides = array<i32>} : memref<2x128xf32, #tpu.memory_space<vmem>>, vector<2x128xf32>,
    return
  }
}

</mosaic_0001>

<bundles_post_ra>
// kernel: tpu_custom_call.1
= control target key start
LH: loop header
LB: loop body
LE: loop exit
PB: predicated region body
PF: predicated region fallthrough
CT: control target
= control target key end

     0   :  { %14 = vsyncpa [#allocation3], 0  ;;  %s1958_s0 = inlined_call_operand.vmem [shape: s32[2,1], index: 0, kind: input, shape index: {}]   ;;  %s1959_s1 = inlined_call_operand.vmem [shape: f32[16,4], index: 1, kind: input, shape index: {}]   ;;  %s1960_s2 = inlined_call_operand.vmem [shape: f32[2,128], index: 2, kind: input, shape index: {}]   ;;  %s1961_s3 = inlined_call_operand.vmem [shape: f32[4,384], index: 3, kind: input, shape index: {}]   ;;  %s1962_s4 = inlined_call_operand.hbm [shape: f32[128,384], index: 4, kind: input, shape index: {}]   ;;  %s1963_s5 = inlined_call_operand.vmem [shape: f32[1,384], index: 5, kind: input, shape index: {}]   ;;  %s1964_s6 = inlined_call_operand.vmem [shape: f32[1,384], index: 6, kind: input, shape index: {}]   ;;  %s1965_s7 = inlined_call_operand.hbm [shape: f32[2,1024], index: 7, kind: output, shape index: {0}]   ;;  %s1966_s8 = inlined_call_operand.hbm [shape: f32[2,128], index: 8, kind: output, shape index: {1}]  }
   0x1   :  { %15 = vsyncpa [#allocation4], 0 }
   0x2   :  { %16 = vsyncpa [#allocation7], 0  ;;  %s29_s29 = sshll.u32 %s1962_s4, 4  ;;  %s1229_s30 = smov [#allocation2]   ;;  %s30_s29 = int_to_ptr.hbm [resolvable:$true] %s29_s29 }
   0x3   :  { %s31_s9 = sshll.u32 %s1229_s30, 4  ;;  %s1230_s10 = smov 384   ;;  %s32_s9 = int_to_ptr.vmem [resolvable:$true] %s31_s9 }
   0x4   :  { %s1231_s11 = smov 24  }
   0x5   :  { %37 = dma.hbm_to_vmem [thread:$0]  %s30_s29, 6144, %s32_s9, [#allocation3], %s1230_s10, %s1230_s10, %s1231_s11  }
   0x6   :  { %1223 = dma.done.wait [#allocation3], 6144  }
   0x7   :  { %1224 = vsyncadd [#allocation3], 4294961152  ;;  %v1283_v0 = vld [vmem:[#allocation2 + $0x168] sm:$0xff]  ;;  %v1285_v1 = vld [vmem:[#allocation2 + $0x150] sm:$0xff]  ;;  %vm73_vm0 = vcmask 1043456   ;;  %vm66_vm1 = vcmask 31744  }
   0x8   :  { %207 = vmatpush.msra.mxu3 %v1283_v0  ;;  %v48_v2 = vld [vmem:[%s1961_s3] sm:$0xff]  ;;  %v1294_v4 = vld [vmem:[#allocation2 + $0x120] sm:$0xff]  ;;  %v1297_v5 = vld [vmem:[#allocation2 + $0x108] sm:$0xff]  ;;  %v1967_v20 = vmov 0   ;;  %vm991_vm10 = vcmask 1041408   ;;  %vm993_vm15 = vcmask 1045508  }
   0x9   :  { %v1291_v3 = vld [vmem:[#allocation2 + $0x138] sm:$0xff]  ;;  %60 = vst [vmem:[#allocation1] ss:$2 sm:$0xff] %v48_v2  ;;  %v1300_v6 = vld [vmem:[#allocation2 + $0x170] sm:$0xff]  ;;  %v1320_v14 = vld [vmem:[#allocation2 + $0x160] sm:$0xff]  ;;  %1052 = vset.pattern.permute.xlu0 %v1967_v20  ;;  %1053 = vset.pattern.permute.xlu1 %v1967_v20  ;;  %s1022_s25 = sshll.u32 %s1966_s8, 4  ;;  %s1023_s25 = int_to_ptr.hbm [resolvable:$true] %s1022_s25 }
   0xa   :  { %208 = vmatpush.msra.mxu3 %v1285_v1  ;;  %v1302_v7 = vld [vmem:[#allocation2 + $0xf0] sm:$0xff]  ;;  %v1304_v8 = vld [vmem:[#allocation2 + $0x178] sm:$0xff]  ;;  %v1322_v15 = vld [vmem:[#allocation2 + $0x140] sm:$0xff]  ;;  %1054 = vset.pattern.permute.xlu2 %v1967_v20  ;;  %s1234_s26 = smov [#allocation5]   ;;  %s1011_s30 = sshll.u32 %s1965_s7, 4  ;;  %s1012_s30 = int_to_ptr.hbm [resolvable:$true] %s1011_s30 }
   0xb   :  { %v1309_v9 = vld [vmem:[%s1959_s1] sm:$0xff]  ;;  %v1324_v16 = vld [vmem:[#allocation2 + $0xc0] sm:$0xff]  ;;  %v1331_v17 = vld [vmem:[#allocation2 + $0x148] sm:$0xff]  ;;  %s1009_s27 = sshll.u32 %s1234_s26, 4  ;;  %s1010_s27 = int_to_ptr.vmem [resolvable:$true] %s1009_s27 }
   0xc   :  { %209 = vmatpush.msra.mxu3 %v1291_v3  ;;  %v1313_v12 = vld [vmem:[#allocation2 + $0x158] sm:$0xff]  ;;  %v1333_v18 = vld [vmem:[#allocation2 + $0x128] sm:$0xff]  ;;  %v1341_v21 = vld [vmem:[#allocation2 + $0x130] sm:$0xff] }
   0xd   :  { %v1315_v13 = vld [vmem:[#allocation2 + $0xd8] sm:$0xff]  ;;  %v1335_v19 = vld [vmem:[#allocation2 + $0xa8] sm:$0xff]  ;;  %v1343_v22 = vld [vmem:[#allocation2 + $0x110] sm:$0xff] }
   0xe   :  { %210 = vmatpush.msra.mxu3 %v1294_v4  ;;  %v1345_v23 = vld [vmem:[#allocation2 + $0x90] sm:$0xff]  ;;  %v1351_v24 = vld [vmem:[#allocation2 + $0x118] sm:$0xff]  ;;  %v1356_v25 = vld [vmem:[%s1959_s1 + $0x8] sm:$0xff] }
   0xf   :  { %v49_v26 = vld [vmem:[%s1961_s3 + $0x8] sm:$0xf]  ;;  %v1361_v27 = vld [vmem:[#allocation2 + $0xf8] sm:$0xff]  ;;  %v1387_v34 = vld [vmem:[#allocation2 + $0xe8] sm:$0xff] }
  0x10   :  { %v63_v10 = vld.sshfl [vmem:[#allocation1] sm:$0xff pattern:$0x75316420]  ;;  %211 = vmatpush.msra.mxu3 %v1297_v5  ;;  %v64_v11 = vld.sshfl [vmem:[#allocation1 + $0x8] sm:$0xff pattern:$0x75316420] }
  0x11   :  { %1037 = vmatpush.msk.msra.mxu0 %vm73_vm0, %v63_v10  ;;  %1040 = vmatpush.msk.msra.mxu1 %vm73_vm0, %v64_v11  ;;  %v1363_v28 = vld [vmem:[#allocation2 + $0x78] sm:$0xff]  ;;  %62 = vst [vmem:[#allocation1 + $0x10] ss:$2 sm:$0xff] %v49_v26  ;;  %v1374_v30 = vld [vmem:[#allocation2 + $0x100] sm:$0xff]  ;;  %v1389_v35 = vld [vmem:[#allocation2 + $0xc8] sm:$0xff] }
  0x12   :  { %212 = vmatpush.msra.mxu3 %v1302_v7  ;;  %1038 = vmatmul.msk.f32.vlgmr.msra.gmra.mxu0 %vm66_vm1, %v1309_v9  ;;  %v1369_v29 = vld [vmem:[%s1958_s0] sm:$0x3]  ;;  %v1377_v31 = vld [vmem:[#allocation2 + $0xe0] sm:$0xff]  ;;  %v1391_v36 = vld [vmem:[#allocation2 + $0x48] sm:$0xff] }
  0x13   :  { %227 = vmatpush.msrb.mxu0 %v1300_v6  ;;  %247 = vmatpush.msrb.mxu1 %v1304_v8  ;;  %2000 = vst [vmem:[#allocation11_spill] sm:$0xff] %v1369_v29  ;;  %vm284_vm2 = vcmp.gt.s32.totalorder %v1369_v29, 0  ;;  %v1379_v32 = vld [vmem:[#allocation2 + $0x60] sm:$0xff]  ;;  %v1396_v37 = vld [vmem:[#allocation2 + $0xd0] sm:$0xff]  ;;  %vm381_vm3 = vcmp.gt.s32.totalorder %v1369_v29, 1  ;;  %v1406_v41 = vld [vmem:[#allocation2 + $0x98] sm:$0xff] }
  0x14   :  { %213 = vmatpush.msra.mxu3 %v1315_v13  ;;  %v285_v33 = vsel %vm284_vm2, 1, %v1967_v20  ;;  %v1398_v38 = vld [vmem:[#allocation2 + $0xb0] sm:$0xff]  ;;  %v1408_v42 = vld [vmem:[#allocation2 + $0x18] sm:$0xff]  ;;  %v382_v44 = vsel %vm381_vm3, 1, %v1967_v20  ;;  %v1417_v45 = vld [vmem:[#allocation2 + $0x80] sm:$0xff]  ;;  %1041 = vmatmul.msk.f32.vlgmr.msra.gmra.mxu1 %vm66_vm1, %v1309_v9  ;;  %vm866_vm4 = vcmp.gt.s32.totalorder %v1369_v29, 6 }
  0x15   :  { %228 = vmatpush.msrb.mxu0 %v1313_v12  ;;  %248 = vmatpush.msrb.mxu1 %v1320_v14  ;;  %v1400_v39 = vld [vmem:[#allocation2 + $0x30] sm:$0xff]  ;;  %2001 = vst [vmem:[#allocation12_spill] sm:$0xff] %v1408_v42  ;;  %v1414_v43 = vld [vmem:[#allocation2 + $0xb8] sm:$0xff]  ;;  %v1419_v46 = vld [vmem:[#allocation2] sm:$0xff]  ;;  %v867_v55 = vsel %vm866_vm4, 1, %v1967_v20 }
  0x16   :  { %214 = vmatpush.msra.mxu3 %v1324_v16  ;;  %287 = vperm.xlu0 %1052, %v285_v33   ;;  %2002 = vst [vmem:[#allocation13_spill] sm:$0xff] %v1419_v46  ;;  %v1430_v47 = vld [vmem:[%s1960_s2] sm:$0x3]  ;;  %v1432_v48 = vld [vmem:[#allocation2 + $0xa0] sm:$0xff]  ;;  %v1434_v49 = vld [vmem:[#allocation2 + $0x68] sm:$0xff] }
  0x17   :  { %229 = vmatpush.msrb.mxu0 %v1322_v15  ;;  %249 = vmatpush.msrb.mxu1 %v1331_v17  ;;  %v1439_v50 = vld [vmem:[#allocation2 + $0x88] sm:$0xff]  ;;  %v1442_v51 = vld [vmem:[#allocation2 + $0x50] sm:$0xff]  ;;  %v1450_v53 = vld [vmem:[#allocation2 + $0x38] sm:$0xff] }
  0x18   :  { %215 = vmatpush.msra.mxu3 %v1335_v19  ;;  %v65_v40 = vld.sshfl [vmem:[#allocation1 + $0x10] sm:$0xff pattern:$0x75316420]  ;;  %v1447_v52 = vld [vmem:[#allocation2 + $0x70] sm:$0xff]  ;;  %v1455_v54 = vld [vmem:[#allocation2 + $0x58] sm:$0xff] }
  0x19   :  { %230 = vmatpush.msrb.mxu0 %v1333_v18  ;;  %250 = vmatpush.msrb.mxu1 %v1341_v21  ;;  %v1459_v56 = vld [vmem:[#allocation2 + $0x20] sm:$0xff]  ;;  %v1468_v58 = vld [vmem:[#allocation2 + $0x8] sm:$0xff]  ;;  %v1478_v60 = vld [vmem:[#allocation2 + $0x10] sm:$0xff] }
  0x1a   :  { %216 = vmatpush.msra.mxu3 %v1345_v23  ;;  %1039 = vmatmul.msk.f32.gmra.mxu0 %vm66_vm1, %v1356_v25  ;;  %2003 = vst [vmem:[#allocation14_spill] sm:$0xff] %v1459_v56  ;;  %v1466_v57 = vld [vmem:[#allocation2 + $0x40] sm:$0xff]  ;;  %v1472_v59 = vld [vmem:[#allocation2 + $0x28] sm:$0xff]  ;;  %v1611_v62 = vld [vmem:[%s1963_s5] sm:$0x7]  ;;  %s1233_s5 = smov [#allocation6]  }
  0x1b   :  { %231 = vmatpush.msrb.mxu0 %v1343_v22  ;;  %251 = vmatpush.msrb.mxu1 %v1351_v24  ;;  %2004 = vst [vmem:[#allocation15_spill] sm:$0xff] %v1468_v58  ;;  %v52_v63 = vperm.slane %v1611_v62, 0  ;;  %v197_v11 = vld [vmem:[%s1964_s6] sm:$0x7]  ;;  %v53_v26 = vperm.slane %v1611_v62, 1  ;;  %s1020_s6 = sshll.u32 %s1233_s5, 4  ;;  %s1021_s6 = int_to_ptr.vmem [resolvable:$true] %s1020_s6 }
  0x1c   :  { %217 = vmatpush.msra.mxu3 %v1363_v28  ;;  %1043 = vmatpush.msk.msra.mxu2 %vm73_vm0, %v65_v40  ;;  %2005 = vst [vmem:[#allocation16_spill] sm:$0xff] %v1472_v59  ;;  %v1627_v29 = vperm.slane %v197_v11, 1 }
  0x1d   :  { %232 = vmatpush.msrb.mxu0 %v1361_v27  ;;  %252 = vmatpush.msrb.mxu1 %v1374_v30  ;;  %2006 = vst [vmem:[#allocation17_spill] sm:$0xff] %v1478_v60 }
  0x1e   :  { %218 = vmatpush.msra.mxu3 %v1379_v32  ;;  %1044 = vmatmul.msk.f32.vlgmr.msra.gmra.mxu2 %vm66_vm1, %v1309_v9  ;;  %2007 = vst [vmem:[#allocation18_spill] sm:$0xff] %v1611_v62 }
  0x1f   :  { %233 = vmatpush.msrb.mxu0 %v1377_v31  ;;  %253 = vmatpush.msrb.mxu1 %v1387_v34  ;;  %2012 = vst [vmem:[#allocation23_spill] sm:$0xff] %v1627_v29 }
  0x20   :  { %219 = vmatpush.msra.mxu3 %v1391_v36  ;;  %384 = vperm.xlu0 %1052, %v382_v44  }
  0x21   :  { %234 = vmatpush.msrb.mxu0 %v1389_v35  ;;  %254 = vmatpush.msrb.mxu1 %v1396_v37 }
  0x22   :  { %220 = vmatpush.msra.mxu3 %v1400_v39  ;;  %292 = vmatpush.msrb.mxu2 %v1283_v0 }
  0x23   :  { %235 = vmatpush.msrb.mxu0 %v1398_v38  ;;  %255 = vmatpush.msrb.mxu1 %v1414_v43 }
  0x24   :  { %221 = vmatpush.msra.mxu3 %v1408_v42  ;;  %293 = vmatpush.msrb.mxu2 %v1285_v1 }
  0x25   :  { %236 = vmatpush.msrb.mxu0 %v1406_v41  ;;  %256 = vmatpush.msrb.mxu1 %v1432_v48 }
  0x26   :  { %222 = vmatpush.msra.mxu3 %v1419_v46  ;;  %1042 = vmatmul.msk.f32.gmra.mxu1 %vm66_vm1, %v1356_v25 }
  0x27   :  { %237 = vmatpush.msrb.mxu0 %v1417_v45  ;;  %223 = vmatmul.f32.vlgmr.msra.gmra.mxu3 %v1430_v47 }
  0x28   :  { %257 = vmatpush.msrb.mxu1 %v1439_v50  ;;  %312 = vmatpush.msrb.mxu3 %v1300_v6 }
  0x29   :  { %238 = vmatpush.msrb.mxu0 %v1434_v49  ;;  %869 = vperm.xlu0 %1052, %v867_v55  }
  0x2a   :  { %258 = vmatpush.msrb.mxu1 %v1447_v52  ;;  %313 = vmatpush.msrb.mxu3 %v1313_v12 }
  0x2b   :  { %239 = vmatpush.msrb.mxu0 %v1442_v51  ;;  %294 = vmatpush.msrb.mxu2 %v1291_v3 }
  0x2c   :  { %259 = vmatpush.msrb.mxu1 %v1455_v54  ;;  %314 = vmatpush.msrb.mxu3 %v1322_v15 }
  0x2d   :  { %240 = vmatpush.msrb.mxu0 %v1450_v53  ;;  %295 = vmatpush.msrb.mxu2 %v1294_v4 }
  0x2e   :  { %260 = vmatpush.msrb.mxu1 %v1466_v57  ;;  %315 = vmatpush.msrb.mxu3 %v1333_v18 }
  0x2f   :  { %241 = vmatpush.msrb.mxu0 %v1459_v56  ;;  %296 = vmatpush.msrb.mxu2 %v1297_v5 }
  0x30   :  { %261 = vmatpush.msrb.mxu1 %v1472_v59  ;;  %316 = vmatpush.msrb.mxu3 %v1343_v22 }
  0x31   :  { %242 = vmatpush.msrb.mxu0 %v1468_v58  ;;  %297 = vmatpush.msrb.mxu2 %v1302_v7 }
  0x32   :  { %243 = vmatmul.f32.vlgmr.msrb.gmra.mxu0 %v1430_v47  ;;  %262 = vmatpush.msrb.mxu1 %v1478_v60 }
  0x33   :  { %332 = vmatpush.msra.mxu0 %v1304_v8  ;;  %263 = vmatmul.f32.vlgmr.msrb.gmra.mxu1 %v1430_v47 }
  0x34   :  { %1045 = vmatmul.msk.f32.gmra.mxu2 %vm66_vm1, %v1356_v25  ;;  %317 = vmatpush.msrb.mxu3 %v1361_v27  ;;  %v1619_v25 = vperm.slane %v197_v11, 0 }
  0x35   :  { %333 = vmatpush.msra.mxu0 %v1320_v14  ;;  %298 = vmatpush.msrb.mxu2 %v1315_v13 }
  0x36   :  { %392 = vmatpush.msra.mxu1 %v1283_v0  ;;  %318 = vmatpush.msrb.mxu3 %v1377_v31  ;;  %2009 = vst [vmem:[#allocation20_spill] sm:$0xff] %v1619_v25 }
  0x37   :  { %334 = vmatpush.msra.mxu0 %v1331_v17  ;;  %299 = vmatpush.msrb.mxu2 %v1324_v16 }
  0x38   :  { %393 = vmatpush.msra.mxu1 %v1285_v1  ;;  %319 = vmatpush.msrb.mxu3 %v1389_v35 }
  0x39   :  { %335 = vmatpush.msra.mxu0 %v1341_v21  ;;  %300 = vmatpush.msrb.mxu2 %v1335_v19 }
  0x3a   :  { %394 = vmatpush.msra.mxu1 %v1291_v3  ;;  %320 = vmatpush.msrb.mxu3 %v1398_v38 }
  0x3b   :  { %336 = vmatpush.msra.mxu0 %v1351_v24  ;;  %301 = vmatpush.msrb.mxu2 %v1345_v23 }
  0x3c   :  { %395 = vmatpush.msra.mxu1 %v1294_v4  ;;  %321 = vmatpush.msrb.mxu3 %v1406_v41 }
  0x3d   :  { %337 = vmatpush.msra.mxu0 %v1374_v30  ;;  %302 = vmatpush.msrb.mxu2 %v1363_v28 }
  0x3e   :  { %396 = vmatpush.msra.mxu1 %v1297_v5  ;;  %322 = vmatpush.msrb.mxu3 %v1417_v45 }
  0x3f   :  { %338 = vmatpush.msra.mxu0 %v1387_v34  ;;  %303 = vmatpush.msrb.mxu2 %v1379_v32 }
  0x40   :  { %397 = vmatpush.msra.mxu1 %v1302_v7  ;;  %323 = vmatpush.msrb.mxu3 %v1434_v49 }
  0x41   :  { %339 = vmatpush.msra.mxu0 %v1396_v37  ;;  %304 = vmatpush.msrb.mxu2 %v1391_v36 }
  0x42   :  { %398 = vmatpush.msra.mxu1 %v1315_v13  ;;  %324 = vmatpush.msrb.mxu3 %v1442_v51 }
  0x43   :  { %340 = vmatpush.msra.mxu0 %v1414_v43  ;;  %305 = vmatpush.msrb.mxu2 %v1400_v39 }
  0x44   :  { %399 = vmatpush.msra.mxu1 %v1324_v16  ;;  %325 = vmatpush.msrb.mxu3 %v1450_v53 }
  0x45   :  { %341 = vmatpush.msra.mxu0 %v1432_v48  ;;  %306 = vmatpush.msrb.mxu2 %v1408_v42 }
  0x46   :  { %400 = vmatpush.msra.mxu1 %v1335_v19  ;;  %326 = vmatpush.msrb.mxu3 %v1459_v56 }
  0x47   :  { %342 = vmatpush.msra.mxu0 %v1439_v50  ;;  %307 = vmatpush.msrb.mxu2 %v1419_v46 }
  0x48   :  { %327 = vmatpush.msrb.mxu3 %v1468_v58  ;;  %401 = vmatpush.msra.mxu1 %v1345_v23 }
  0x49   :  { %343 = vmatpush.msra.mxu0 %v1447_v52  ;;  %412 = vmatpush.msra.mxu2 %v1300_v6 }
  0x4a   :  { %432 = vmatpush.msra.mxu3 %v1304_v8  ;;  %402 = vmatpush.msra.mxu1 %v1363_v28 }
  0x4b   :  { %344 = vmatpush.msra.mxu0 %v1455_v54  ;;  %413 = vmatpush.msra.mxu2 %v1313_v12 }
  0x4c   :  { %433 = vmatpush.msra.mxu3 %v1320_v14  ;;  %403 = vmatpush.msra.mxu1 %v1379_v32 }
  0x4d   :  { %345 = vmatpush.msra.mxu0 %v1466_v57  ;;  %414 = vmatpush.msra.mxu2 %v1322_v15 }
  0x4e   :  { %434 = vmatpush.msra.mxu3 %v1331_v17  ;;  %404 = vmatpush.msra.mxu1 %v1391_v36 }
  0x4f   :  { %346 = vmatpush.msra.mxu0 %v1472_v59  ;;  %415 = vmatpush.msra.mxu2 %v1333_v18 }
  0x50   :  { %435 = vmatpush.msra.mxu3 %v1341_v21  ;;  %405 = vmatpush.msra.mxu1 %v1400_v39 }
  0x51   :  { %347 = vmatpush.msra.mxu0 %v1478_v60  ;;  %416 = vmatpush.msra.mxu2 %v1343_v22 }
  0x52   :  { %436 = vmatpush.msra.mxu3 %v1351_v24  ;;  %406 = vmatpush.msra.mxu1 %v1408_v42 }
  0x53   :  { %492 = vmatpush.msrb.mxu0 %v1283_v0  ;;  %417 = vmatpush.msra.mxu2 %v1361_v27 }
  0x54   :  { %437 = vmatpush.msra.mxu3 %v1374_v30  ;;  %407 = vmatpush.msra.mxu1 %v1419_v46 }
  0x55   :  { %493 = vmatpush.msrb.mxu0 %v1285_v1  ;;  %418 = vmatpush.msra.mxu2 %v1377_v31 }
  0x56   :  { %438 = vmatpush.msra.mxu3 %v1387_v34  ;;  %512 = vmatpush.msrb.mxu1 %v1300_v6 }
  0x57   :  { %494 = vmatpush.msrb.mxu0 %v1291_v3  ;;  %419 = vmatpush.msra.mxu2 %v1389_v35 }
  0x58   :  { %439 = vmatpush.msra.mxu3 %v1396_v37  ;;  %513 = vmatpush.msrb.mxu1 %v1313_v12 }
  0x59   :  { %495 = vmatpush.msrb.mxu0 %v1294_v4  ;;  %420 = vmatpush.msra.mxu2 %v1398_v38 }
  0x5a   :  { %440 = vmatpush.msra.mxu3 %v1414_v43  ;;  %514 = vmatpush.msrb.mxu1 %v1322_v15 }
  0x5b   :  { %496 = vmatpush.msrb.mxu0 %v1297_v5  ;;  %421 = vmatpush.msra.mxu2 %v1406_v41 }
  0x5c   :  { %441 = vmatpush.msra.mxu3 %v1432_v48  ;;  %515 = vmatpush.msrb.mxu1 %v1333_v18 }
  0x5d   :  { %497 = vmatpush.msrb.mxu0 %v1302_v7  ;;  %422 = vmatpush.msra.mxu2 %v1417_v45 }
  0x5e   :  { %442 = vmatpush.msra.mxu3 %v1439_v50  ;;  %516 = vmatpush.msrb.mxu1 %v1343_v22 }
  0x5f   :  { %498 = vmatpush.msrb.mxu0 %v1315_v13  ;;  %423 = vmatpush.msra.mxu2 %v1434_v49 }
  0x60   :  { %443 = vmatpush.msra.mxu3 %v1447_v52  ;;  %517 = vmatpush.msrb.mxu1 %v1361_v27 }
  0x61   :  { %499 = vmatpush.msrb.mxu0 %v1324_v16  ;;  %424 = vmatpush.msra.mxu2 %v1442_v51 }
  0x62   :  { %444 = vmatpush.msra.mxu3 %v1455_v54  ;;  %518 = vmatpush.msrb.mxu1 %v1377_v31 }
  0x63   :  { %500 = vmatpush.msrb.mxu0 %v1335_v19  ;;  %425 = vmatpush.msra.mxu2 %v1450_v53 }
  0x64   :  { %445 = vmatpush.msra.mxu3 %v1466_v57  ;;  %519 = vmatpush.msrb.mxu1 %v1389_v35 }
  0x65   :  { %501 = vmatpush.msrb.mxu0 %v1345_v23  ;;  %426 = vmatpush.msra.mxu2 %v1459_v56 }
  0x66   :  { %446 = vmatpush.msra.mxu3 %v1472_v59  ;;  %520 = vmatpush.msrb.mxu1 %v1398_v38 }
  0x67   :  { %502 = vmatpush.msrb.mxu0 %v1363_v28  ;;  %427 = vmatpush.msra.mxu2 %v1468_v58 }
  0x68   :  { %447 = vmatpush.msra.mxu3 %v1478_v60  ;;  %521 = vmatpush.msrb.mxu1 %v1406_v41 }
  0x69   :  { %503 = vmatpush.msrb.mxu0 %v1379_v32 }
  0x6a   :  { %522 = vmatpush.msrb.mxu1 %v1417_v45 }
  0x6b   :  { %504 = vmatpush.msrb.mxu0 %v1391_v36 }
  0x6c   :  { %523 = vmatpush.msrb.mxu1 %v1434_v49 }
  0x6d   :  { %505 = vmatpush.msrb.mxu0 %v1400_v39 }
  0x6e   :  { %524 = vmatpush.msrb.mxu1 %v1442_v51 }
  0x6f   :  { %506 = vmatpush.msrb.mxu0 %v1408_v42 }
  0x70   :  { %525 = vmatpush.msrb.mxu1 %v1450_v53 }
  0x71   :  { %507 = vmatpush.msrb.mxu0 %v1419_v46 }
  0x72   :  { %526 = vmatpush.msrb.mxu1 %v1459_v56 }
  0x74   :  { %527 = vmatpush.msrb.mxu1 %v1468_v58 }
  0x8f   :  { %v97_v61 = vpop.f32.mrf.mxu0 }
  0x90   :  { %v1624_v55 = vadd.f32 %v97_v61, %v52_v63 }
  0x91   :  { %v120_v10 = vpop.f32.mrf.mxu1 }
  0x92   :  { %2011 = vst [vmem:[#allocation22_spill] sm:$0xff] %v1624_v55  ;;  %v1630_v58 = vadd.f32 %v120_v10, %v53_v26 }
  0x94   :  { %2013 = vst [vmem:[#allocation24_spill] sm:$0xff] %v1630_v58 }
  0x97   :  { %v100_v2 = vpop.f32.mrf.mxu0 }
  0x98   :  { %v1614_v9 = vadd.f32 %v100_v2, %v52_v63  ;;  %v1991_v63 = vperm.slane %v1611_v62, 2 }
  0x9a   :  { %2008 = vst [vmem:[#allocation19_spill] sm:$0xff] %v1614_v9 }
  0x9b   :  { %v2024_v62 = vld [vmem:[#allocation24_spill] sm:$0xff] }
  0xa3   :  { %v123_v33 = vpop.f32.mrf.mxu1 }
  0xa4   :  { %v1622_v44 = vadd.f32 %v123_v33, %v53_v26  ;;  %v1634_v33 = vperm.slane %v197_v11, 2 }
  0xa6   :  { %2010 = vst [vmem:[#allocation21_spill] sm:$0xff] %v1622_v44  ;;  %v143_v44 = vpop.f32.mrf.mxu2 }
  0xa7   :  { %2014 = vst [vmem:[#allocation25_spill] sm:$0xff] %v1634_v33  ;;  %v1640_v26 = vadd.f32 %v143_v44, %v1991_v63 }
  0xaa   :  { %v224_v40 = vpop.f32.mrf.mxu3 }
  0xab   :  { %v225_v20 = vadd.f32 %v224_v40, %v1619_v25 }
  0xad   :  { %v267_v2 = vadd.f32 %v225_v20, %v1624_v55 }
  0xaf   :  { %v244_v9 = vpop.f32.mrf.mxu0  ;;  %v269_v46 = vmul.f32 0.5, %v267_v2 }
  0xb0   :  { %v245_v60 = vadd.f32 %v244_v9, %v1627_v29  ;;  %v264_v61 = vpop.f32.mrf.mxu1  ;;  %v288_v29 = vpop.permute.xlu0 %287 }
  0xb1   :  { %1055 = vtanh.f32 %v269_v46  ;;  %v265_v20 = vadd.f32 %v264_v61, %v1634_v33  ;;  %vm289_vm5 = vcmp.eq.s32.totalorder %v288_v29, 1  ;;  %v2015_v29 = vld [vmem:[#allocation12_spill] sm:$0xff] }
  0xb2   :  { %v268_v56 = vadd.f32 %v245_v60, %v1630_v58 }
  0xb4   :  { %v273_v42 = vmul.f32 0.5, %v268_v56 }
  0xb6   :  { %1057 = vtanh.f32 %v273_v42 }
  0xb7   :  { %v1056_v40 = vpop.eup %1055 }
  0xb8   :  { %v271_v55 = vmul.f32 0.5, %v1056_v40  ;;  %v2019_v40 = vld [vmem:[#allocation15_spill] sm:$0xff] }
  0xba   :  { %v272_v10 = vadd.f32 0.5, %v271_v55 }
  0xbc   :  { %v1058_v46 = vpop.eup %1057  ;;  %v277_v9 = vmul.f32 %v272_v10, %v265_v20  ;;  %v1700_v20 = vpop.f32.mrf.mxu2 }
  0xbd   :  { %v275_v60 = vmul.f32 0.5, %v1058_v46  ;;  %2020 = vst [vmem:[#allocation26_spill] sm:$0xff] %v1700_v20 }
  0xbe   :  { %v278_v56 = vadd.f32 %v277_v9, %v1640_v26  ;;  %v2021_v9 = vld [vmem:[#allocation20_spill] sm:$0xff] }
  0xbf   :  { %v276_v42 = vadd.f32 0.5, %v275_v60 }
  0xc0   :  { %1059 = vtanh.f32 %v278_v56  ;;  %v2022_v56 = vld [vmem:[#allocation23_spill] sm:$0xff] }
  0xc1   :  { %v280_v11 = vsub.f32 1.0, %v276_v42  ;;  %v282_v58 = vmul.f32 %v276_v42, %v1430_v47 }
  0xc6   :  { %v1060_v2 = vpop.eup %1059 }
  0xc7   :  { %v281_v25 = vmul.f32 %v1060_v2, %v280_v11 }
  0xc9   :  { %v283_v61 = vadd.f32 %v282_v58, %v281_v25  ;;  %v2017_v58 = vld [vmem:[#allocation17_spill] sm:$0xff] }
  0xca   :  { %v2018_v25 = vld [vmem:[#allocation13_spill] sm:$0xff] }
  0xcb   :  { %v1645_v55 = vsel %vm289_vm5, %v283_v61, %v1430_v47  ;;  %v1647_v44 = vsel %vm289_vm5, %v283_v61, 0.0  ;;  %v2016_v47 = vld [vmem:[#allocation14_spill] sm:$0xff] }
  0xcc   :  { %308 = vmatmul.f32.vlgmr.msrb.gmra.mxu2 %v1645_v55  ;;  %328 = vmatmul.f32.vlgmr.msrb.gmra.mxu3 %v1645_v55  ;;  %v2023_v61 = vld [vmem:[#allocation22_spill] sm:$0xff] }
  0xcd   :  { %348 = vmatmul.f32.vlgmr.msra.gmra.mxu0 %v1645_v55  ;;  %532 = vmatpush.msrb.mxu2 %v1304_v8 }
  0xce   :  { %592 = vmatpush.msrb.mxu3 %v1283_v0  ;;  %612 = vmatpush.msra.mxu0 %v1300_v6 }
  0xcf   :  { %533 = vmatpush.msrb.mxu2 %v1320_v14 }
  0xd0   :  { %593 = vmatpush.msrb.mxu3 %v1285_v1  ;;  %613 = vmatpush.msra.mxu0 %v1313_v12 }
  0xd1   :  { %534 = vmatpush.msrb.mxu2 %v1331_v17 }
  0xd2   :  { %594 = vmatpush.msrb.mxu3 %v1291_v3  ;;  %614 = vmatpush.msra.mxu0 %v1322_v15 }
  0xd3   :  { %535 = vmatpush.msrb.mxu2 %v1341_v21 }
  0xd4   :  { %595 = vmatpush.msrb.mxu3 %v1294_v4  ;;  %615 = vmatpush.msra.mxu0 %v1333_v18 }
  0xd5   :  { %536 = vmatpush.msrb.mxu2 %v1351_v24 }
  0xd6   :  { %596 = vmatpush.msrb.mxu3 %v1297_v5  ;;  %616 = vmatpush.msra.mxu0 %v1343_v22 }
  0xd7   :  { %537 = vmatpush.msrb.mxu2 %v1374_v30 }
  0xd8   :  { %597 = vmatpush.msrb.mxu3 %v1302_v7  ;;  %617 = vmatpush.msra.mxu0 %v1361_v27 }
  0xd9   :  { %538 = vmatpush.msrb.mxu2 %v1387_v34 }
  0xda   :  { %598 = vmatpush.msrb.mxu3 %v1315_v13  ;;  %618 = vmatpush.msra.mxu0 %v1377_v31 }
  0xdb   :  { %539 = vmatpush.msrb.mxu2 %v1396_v37 }
  0xdc   :  { %599 = vmatpush.msrb.mxu3 %v1324_v16  ;;  %619 = vmatpush.msra.mxu0 %v1389_v35 }
  0xdd   :  { %540 = vmatpush.msrb.mxu2 %v1414_v43 }
  0xde   :  { %600 = vmatpush.msrb.mxu3 %v1335_v19  ;;  %620 = vmatpush.msra.mxu0 %v1398_v38 }
  0xdf   :  { %541 = vmatpush.msrb.mxu2 %v1432_v48 }
  0xe0   :  { %601 = vmatpush.msrb.mxu3 %v1345_v23  ;;  %621 = vmatpush.msra.mxu0 %v1406_v41 }
  0xe1   :  { %542 = vmatpush.msrb.mxu2 %v1439_v50 }
  0xe2   :  { %602 = vmatpush.msrb.mxu3 %v1363_v28  ;;  %622 = vmatpush.msra.mxu0 %v1417_v45 }
  0xe3   :  { %543 = vmatpush.msrb.mxu2 %v1447_v52 }
  0xe4   :  { %603 = vmatpush.msrb.mxu3 %v1379_v32  ;;  %623 = vmatpush.msra.mxu0 %v1434_v49 }
  0xe5   :  { %544 = vmatpush.msrb.mxu2 %v1455_v54 }
  0xe6   :  { %604 = vmatpush.msrb.mxu3 %v1391_v36  ;;  %624 = vmatpush.msra.mxu0 %v1442_v51 }
  0xe7   :  { %545 = vmatpush.msrb.mxu2 %v1466_v57 }
  0xe8   :  { %605 = vmatpush.msrb.mxu3 %v1400_v39  ;;  %625 = vmatpush.msra.mxu0 %v1450_v53 }
  0xe9   :  { %546 = vmatpush.msrb.mxu2 %v1472_v59  ;;  %v2026_v59 = vmov 0  }
  0xea   :  { %606 = vmatpush.msrb.mxu3 %v2015_v29  ;;  %626 = vmatpush.msra.mxu0 %v2016_v47 }
  0xeb   :  { %547 = vmatpush.msrb.mxu2 %v2017_v58  ;;  %v2025_v58 = vld [vmem:[#allocation11_spill] sm:$0xff] }
  0xec   :  { %607 = vmatpush.msrb.mxu3 %v2018_v25  ;;  %627 = vmatpush.msra.mxu0 %v2019_v40  ;;  %vm481_vm6 = vcmp.gt.s32.totalorder %v2025_v58, 2  ;;  %vm581_vm7 = vcmp.gt.s32.totalorder %v2025_v58, 3  ;;  %vm966_vm8 = vcmp.gt.s32.totalorder %v2025_v58, 7 }
  0xed   :  { %v482_v40 = vsel %vm481_vm6, 1, %v2026_v59 }
  0xee   :  { %484 = vperm.xlu1 %1053, %v482_v40   ;;  %v967_v40 = vsel %vm966_vm8, 1, %v2026_v59 }
 0x14a   :  { %v349_v20 = vpop.f32.mrf.mxu0 }
 0x14f   :  { %v309_v10 = vpop.f32.mrf.mxu2  ;;  %v329_v46 = vpop.f32.mrf.mxu3 }
 0x150   :  { %v310_v60 = vadd.f32 %v309_v10, %v2021_v9  ;;  %v330_v42 = vadd.f32 %v329_v46, %v2022_v56  ;;  %v350_v10 = vadd.f32 %v349_v20, %v1634_v33  ;;  %v582_v46 = vsel %vm581_vm7, 1, %v2026_v59 }
 0x151   :  { %584 = vperm.xlu1 %1053, %v582_v46   ;;  %v377_v33 = vrot.slane %v1645_v55, 6 }
 0x152   :  { %v353_v11 = vrot.slane %v310_v60, 6  ;;  %v357_v2 = vrot.slane %v330_v42, 6 }
 0x154   :  { %v355_v63 = vadd.f32 %v353_v11, %v2023_v61  ;;  %v359_v47 = vadd.f32 %v357_v2, %v2024_v62 }
 0x156   :  { %v360_v29 = vmul.f32 0.5, %v355_v63  ;;  %v364_v25 = vmul.f32 0.5, %v359_v47  ;;  %v369_v63 = vrot.slane %v350_v10, 6  ;;  %v385_v10 = vpop.permute.xlu0 %384 }
 0x157   :  { %vm386_vm9 = vcmp.eq.s32.totalorder %v385_v10, 1 }
 0x158   :  { %1061 = vtanh.f32 %v360_v29 }
 0x159   :  { %1063 = vtanh.f32 %v364_v25  ;;  %969 = vperm.xlu1 %1053, %v967_v40  }
 0x15e   :  { %v1062_v60 = vpop.eup %1061 }
 0x15f   :  { %v362_v42 = vmul.f32 0.5, %v1062_v60  ;;  %v1064_v11 = vpop.eup %1063 }
 0x160   :  { %v366_v62 = vmul.f32 0.5, %v1064_v11 }
 0x161   :  { %v363_v2 = vadd.f32 0.5, %v362_v42 }
 0x162   :  { %v367_v25 = vadd.f32 0.5, %v366_v62 }
 0x163   :  { %v371_v47 = vmul.f32 %v369_v63, %v363_v2 }
 0x164   :  { %v374_v20 = vsub.f32 1.0, %v367_v25  ;;  %v379_v46 = vmul.f32 %v377_v33, %v367_v25  ;;  %v2028_v33 = vld [vmem:[#allocation16_spill] sm:$0xff] }
 0x165   :  { %v372_v29 = vadd.f32 %v371_v47, %v1640_v26  ;;  %v2033_v47 = vld [vmem:[#allocation15_spill] sm:$0xff] }
 0x167   :  { %1065 = vtanh.f32 %v372_v29 }
 0x16d   :  { %v1066_v56 = vpop.eup %1065 }
 0x16e   :  { %v375_v60 = vmul.f32 %v1066_v56, %v374_v20  ;;  %v2031_v56 = vld [vmem:[#allocation17_spill] sm:$0xff]  ;;  %v2034_v20 = vld [vmem:[#allocation22_spill] sm:$0xff] }
 0x170   :  { %v380_v61 = vadd.f32 %v379_v46, %v375_v60 }
 0x172   :  { %v388_v42 = vrot.slane %v380_v61, 2  ;;  %v2032_v61 = vld [vmem:[#allocation13_spill] sm:$0xff] }
 0x174   :  { %v1716_v63 = vsel %vm386_vm9, %v388_v42, %v1645_v55  ;;  %v391_v11 = vsel %vm386_vm9, %v388_v42, 0.0  ;;  %v2029_v55 = vld [vmem:[#allocation12_spill] sm:$0xff]  ;;  %v2035_v42 = vld [vmem:[#allocation23_spill] sm:$0xff] }
 0x175   :  { %408 = vmatmul.f32.vlgmr.msra.gmra.mxu1 %v1716_v63  ;;  %v985_v2 = vrot.slane %v391_v11, 6  ;;  %428 = vmatmul.f32.vlgmr.msra.gmra.mxu2 %v1716_v63 }
 0x176   :  { %448 = vmatmul.f32.vlgmr.msra.gmra.mxu3 %v1716_v63  ;;  %632 = vmatpush.msra.mxu1 %v1304_v8 }
 0x177   :  { %677 = vmatpush.msra.mxu2 %v1283_v0  ;;  %697 = vmatpush.msra.mxu3 %v1300_v6  ;;  %v1726_v62 = vsel %vm991_vm10, %v1647_v44, %v985_v2  ;;  %v2030_v44 = vld [vmem:[#allocation14_spill] sm:$0xff] }
 0x178   :  { %2027 = vst [vmem:[#allocation27_spill] sm:$0xff] %v1726_v62  ;;  %633 = vmatpush.msra.mxu1 %v1320_v14  ;;  %v2036_v62 = vld [vmem:[#allocation24_spill] sm:$0xff] }
 0x179   :  { %678 = vmatpush.msra.mxu2 %v1285_v1  ;;  %698 = vmatpush.msra.mxu3 %v1313_v12 }
 0x17a   :  { %634 = vmatpush.msra.mxu1 %v1331_v17 }
 0x17b   :  { %679 = vmatpush.msra.mxu2 %v1291_v3  ;;  %699 = vmatpush.msra.mxu3 %v1322_v15 }
 0x17c   :  { %635 = vmatpush.msra.mxu1 %v1341_v21 }
 0x17d   :  { %680 = vmatpush.msra.mxu2 %v1294_v4  ;;  %700 = vmatpush.msra.mxu3 %v1333_v18 }
 0x17e   :  { %636 = vmatpush.msra.mxu1 %v1351_v24 }
 0x17f   :  { %681 = vmatpush.msra.mxu2 %v1297_v5  ;;  %701 = vmatpush.msra.mxu3 %v1343_v22 }
 0x180   :  { %637 = vmatpush.msra.mxu1 %v1374_v30 }
 0x181   :  { %682 = vmatpush.msra.mxu2 %v1302_v7  ;;  %702 = vmatpush.msra.mxu3 %v1361_v27 }
 0x182   :  { %638 = vmatpush.msra.mxu1 %v1387_v34 }
 0x183   :  { %683 = vmatpush.msra.mxu2 %v1315_v13  ;;  %703 = vmatpush.msra.mxu3 %v1377_v31 }
 0x184   :  { %639 = vmatpush.msra.mxu1 %v1396_v37 }
 0x185   :  { %684 = vmatpush.msra.mxu2 %v1324_v16  ;;  %704 = vmatpush.msra.mxu3 %v1389_v35 }
 0x186   :  { %640 = vmatpush.msra.mxu1 %v1414_v43 }
 0x187   :  { %685 = vmatpush.msra.mxu2 %v1335_v19  ;;  %705 = vmatpush.msra.mxu3 %v1398_v38 }
 0x188   :  { %641 = vmatpush.msra.mxu1 %v1432_v48 }
 0x189   :  { %686 = vmatpush.msra.mxu2 %v1345_v23  ;;  %706 = vmatpush.msra.mxu3 %v1406_v41 }
 0x18a   :  { %642 = vmatpush.msra.mxu1 %v1439_v50 }
 0x18b   :  { %687 = vmatpush.msra.mxu2 %v1363_v28  ;;  %707 = vmatpush.msra.mxu3 %v1417_v45 }
 0x18c   :  { %643 = vmatpush.msra.mxu1 %v1447_v52 }
 0x18d   :  { %688 = vmatpush.msra.mxu2 %v1379_v32  ;;  %708 = vmatpush.msra.mxu3 %v1434_v49 }
 0x18e   :  { %644 = vmatpush.msra.mxu1 %v1455_v54 }
 0x18f   :  { %689 = vmatpush.msra.mxu2 %v1391_v36  ;;  %709 = vmatpush.msra.mxu3 %v1442_v51 }
 0x190   :  { %645 = vmatpush.msra.mxu1 %v1466_v57 }
 0x191   :  { %690 = vmatpush.msra.mxu2 %v1400_v39  ;;  %710 = vmatpush.msra.mxu3 %v1450_v53 }
 0x192   :  { %646 = vmatpush.msra.mxu1 %v2028_v33 }
 0x193   :  { %691 = vmatpush.msra.mxu2 %v2029_v55  ;;  %711 = vmatpush.msra.mxu3 %v2030_v44  ;;  %v2037_v44 = vld [vmem:[#allocation25_spill] sm:$0xff] }
 0x194   :  { %647 = vmatpush.msra.mxu1 %v2031_v56 }
 0x195   :  { %692 = vmatpush.msra.mxu2 %v2032_v61  ;;  %712 = vmatpush.msra.mxu3 %v2033_v47 }
 0x1f2   :  { %v409_v29 = vpop.f32.mrf.mxu1 }
 0x1f3   :  { %v410_v40 = vadd.f32 %v409_v29, %v2021_v9 }
 0x1f5   :  { %v453_v25 = vrot.slane %v410_v40, 4 }
 0x1f7   :  { %v455_v60 = vadd.f32 %v453_v25, %v2034_v20  ;;  %v485_v20 = vpop.permute.xlu1 %484 }
 0x1f8   :  { %v429_v46 = vpop.f32.mrf.mxu2  ;;  %vm486_vm11 = vcmp.eq.s32.totalorder %v485_v20, 1  ;;  %v1104_v20 = vld [vmem:[#allocation2 + $0x168] sm:$0xff] }
 0x1f9   :  { %v460_v10 = vmul.f32 0.5, %v455_v60  ;;  %v430_v11 = vadd.f32 %v429_v46, %v2035_v42  ;;  %v449_v58 = vpop.f32.mrf.mxu3 }
 0x1fa   :  { %v450_v61 = vadd.f32 %v449_v58, %v2037_v44 }
 0x1fb   :  { %1067 = vtanh.f32 %v460_v10  ;;  %v457_v2 = vrot.slane %v430_v11, 4  ;;  %v477_v11 = vrot.slane %v1716_v63, 4 }
 0x1fc   :  { %v469_v29 = vrot.slane %v450_v61, 4 }
 0x1fd   :  { %v459_v59 = vadd.f32 %v457_v2, %v2036_v62 }
 0x1ff   :  { %v464_v56 = vmul.f32 0.5, %v459_v59 }
 0x201   :  { %v1068_v55 = vpop.eup %1067  ;;  %1069 = vtanh.f32 %v464_v56 }
 0x202   :  { %v462_v47 = vmul.f32 0.5, %v1068_v55 }
 0x204   :  { %v463_v33 = vadd.f32 0.5, %v462_v47  ;;  %v1854_v47 = vld [vmem:[#allocation2 + $0x178] sm:$0xff] }
 0x206   :  { %v471_v40 = vmul.f32 %v469_v29, %v463_v33  ;;  %v1105_v29 = vld [vmem:[#allocation2 + $0x170] sm:$0xff] }
 0x207   :  { %v1070_v9 = vpop.eup %1069 }
 0x208   :  { %v466_v25 = vmul.f32 0.5, %v1070_v9  ;;  %v472_v60 = vadd.f32 %v471_v40, %v1640_v26 }
 0x20a   :  { %1071 = vtanh.f32 %v472_v60  ;;  %v467_v46 = vadd.f32 0.5, %v466_v25  ;;  %v1858_v25 = vld [vmem:[#allocation2 + $0x160] sm:$0xff]  ;;  %v2049_v60 = vld [vmem:[#allocation27_spill] sm:$0xff] }
 0x20c   :  { %v474_v10 = vsub.f32 1.0, %v467_v46  ;;  %v479_v59 = vmul.f32 %v477_v11, %v467_v46  ;;  %v1108_v11 = vld [vmem:[#allocation2 + $0x158] sm:$0xff] }
 0x210   :  { %v1072_v2 = vpop.eup %1071 }
 0x211   :  { %v475_v62 = vmul.f32 %v1072_v2, %v474_v10  ;;  %v1107_v10 = vld [vmem:[#allocation2 + $0x150] sm:$0xff]  ;;  %v1863_v2 = vld [vmem:[#allocation2 + $0x148] sm:$0xff] }
 0x213   :  { %v480_v58 = vadd.f32 %v479_v59, %v475_v62  ;;  %v1110_v59 = vld [vmem:[#allocation2 + $0x138] sm:$0xff] }
 0x215   :  { %v488_v56 = vrot.slane %v480_v58, 4  ;;  %v1111_v58 = vld [vmem:[#allocation2 + $0x140] sm:$0xff] }
 0x217   :  { %v1781_v55 = vsel %vm486_vm11, %v488_v56, %v1716_v63  ;;  %v1783_v33 = vsel %vm486_vm11, %v488_v56, 0.0  ;;  %v1866_v56 = vld [vmem:[#allocation2 + $0x130] sm:$0xff] }
 0x218   :  { %508 = vmatmul.f32.vlgmr.msrb.gmra.mxu0 %v1781_v55  ;;  %528 = vmatmul.f32.vlgmr.msrb.gmra.mxu1 %v1781_v55  ;;  %v986_v61 = vrot.slane %v1783_v33, 4  ;;  %v1114_v33 = vld [vmem:[#allocation2 + $0x128] sm:$0xff] }
 0x219   :  { %548 = vmatmul.f32.vlgmr.msrb.gmra.mxu2 %v1781_v55  ;;  %717 = vmatpush.msrb.mxu0 %v1304_v8 }
 0x21a   :  { %777 = vmatpush.msrb.mxu1 %v1283_v0  ;;  %797 = vmatpush.msrb.mxu2 %v1300_v6  ;;  %v2038_v0 = vld [vmem:[#allocation16_spill] sm:$0xff]  ;;  %v2043_v6 = vld [vmem:[#allocation15_spill] sm:$0xff] }
 0x21b   :  { %718 = vmatpush.msrb.mxu0 %v1320_v14 }
 0x21c   :  { %778 = vmatpush.msrb.mxu1 %v1285_v1  ;;  %798 = vmatpush.msrb.mxu2 %v1313_v12  ;;  %v2039_v1 = vld [vmem:[#allocation12_spill] sm:$0xff] }
 0x21d   :  { %719 = vmatpush.msrb.mxu0 %v1331_v17  ;;  %v2044_v12 = vld [vmem:[#allocation20_spill] sm:$0xff]  ;;  %v2045_v17 = vld [vmem:[#allocation22_spill] sm:$0xff] }
 0x21e   :  { %779 = vmatpush.msrb.mxu1 %v1291_v3  ;;  %799 = vmatpush.msrb.mxu2 %v1322_v15  ;;  %v2040_v3 = vld [vmem:[#allocation14_spill] sm:$0xff] }
 0x21f   :  { %720 = vmatpush.msrb.mxu0 %v1341_v21 }
 0x220   :  { %780 = vmatpush.msrb.mxu1 %v1294_v4  ;;  %800 = vmatpush.msrb.mxu2 %v1333_v18  ;;  %v2041_v4 = vld [vmem:[#allocation17_spill] sm:$0xff] }
 0x221   :  { %721 = vmatpush.msrb.mxu0 %v1351_v24 }
 0x222   :  { %781 = vmatpush.msrb.mxu1 %v1297_v5  ;;  %801 = vmatpush.msrb.mxu2 %v1343_v22  ;;  %v2042_v5 = vld [vmem:[#allocation13_spill] sm:$0xff] }
 0x223   :  { %722 = vmatpush.msrb.mxu0 %v1374_v30 }
 0x224   :  { %782 = vmatpush.msrb.mxu1 %v1302_v7  ;;  %802 = vmatpush.msrb.mxu2 %v1361_v27  ;;  %v2048_v27 = vmov 0  }
 0x225   :  { %723 = vmatpush.msrb.mxu0 %v1387_v34 }
 0x226   :  { %783 = vmatpush.msrb.mxu1 %v1315_v13  ;;  %803 = vmatpush.msrb.mxu2 %v1377_v31 }
 0x227   :  { %724 = vmatpush.msrb.mxu0 %v1396_v37 }
 0x228   :  { %784 = vmatpush.msrb.mxu1 %v1324_v16  ;;  %804 = vmatpush.msrb.mxu2 %v1389_v35 }
 0x229   :  { %725 = vmatpush.msrb.mxu0 %v1414_v43 }
 0x22a   :  { %785 = vmatpush.msrb.mxu1 %v1335_v19  ;;  %805 = vmatpush.msrb.mxu2 %v1398_v38  ;;  %v2046_v19 = vld [vmem:[#allocation24_spill] sm:$0xff] }
 0x22b   :  { %726 = vmatpush.msrb.mxu0 %v1432_v48  ;;  %v577_v48 = vrot.slane %v1781_v55, 2 }
 0x22c   :  { %786 = vmatpush.msrb.mxu1 %v1345_v23  ;;  %806 = vmatpush.msrb.mxu2 %v1406_v41  ;;  %v2047_v23 = vld [vmem:[#allocation11_spill] sm:$0xff] }
 0x22d   :  { %727 = vmatpush.msrb.mxu0 %v1439_v50  ;;  %vm669_vm12 = vcmp.gt.s32.totalorder %v2047_v23, 4  ;;  %vm766_vm13 = vcmp.gt.s32.totalorder %v2047_v23, 5  ;;  %v1884_v23 = vld [vmem:[#allocation2 + $0xa0] sm:$0xff] }
 0x22e   :  { %787 = vmatpush.msrb.mxu1 %v1363_v28  ;;  %807 = vmatpush.msrb.mxu2 %v1417_v45  ;;  %v670_v28 = vsel %vm669_vm12, 1, %v2048_v27 }
 0x22f   :  { %728 = vmatpush.msrb.mxu0 %v1447_v52  ;;  %672 = vperm.xlu2 %1054, %v670_v28   ;;  %v1887_v28 = vld [vmem:[#allocation2 + $0x88] sm:$0xff] }
 0x230   :  { %788 = vmatpush.msrb.mxu1 %v1379_v32  ;;  %808 = vmatpush.msrb.mxu2 %v1434_v49  ;;  %v767_v32 = vsel %vm766_vm13, 1, %v2048_v27  ;;  %v1132_v27 = vld [vmem:[#allocation2 + $0x98] sm:$0xff] }
 0x231   :  { %729 = vmatpush.msrb.mxu0 %v1455_v54  ;;  %v585_v54 = vpop.permute.xlu1 %584 }
 0x232   :  { %789 = vmatpush.msrb.mxu1 %v1391_v36  ;;  %809 = vmatpush.msrb.mxu2 %v1442_v51  ;;  %vm586_vm14 = vcmp.eq.s32.totalorder %v585_v54, 1 }
 0x233   :  { %730 = vmatpush.msrb.mxu0 %v1466_v57 }
 0x234   :  { %790 = vmatpush.msrb.mxu1 %v1400_v39  ;;  %810 = vmatpush.msrb.mxu2 %v1450_v53 }
 0x235   :  { %731 = vmatpush.msrb.mxu0 %v2038_v0 }
 0x236   :  { %791 = vmatpush.msrb.mxu1 %v2039_v1  ;;  %811 = vmatpush.msrb.mxu2 %v2040_v3  ;;  %v1869_v1 = vld [vmem:[#allocation2 + $0x118] sm:$0xff]  ;;  %v1116_v3 = vld [vmem:[#allocation2 + $0x108] sm:$0xff] }
 0x237   :  { %732 = vmatpush.msrb.mxu0 %v2041_v4  ;;  %769 = vperm.xlu2 %1054, %v767_v32   ;;  %v1890_v32 = vld [vmem:[#allocation2 + $0x70] sm:$0xff] }
 0x238   :  { %792 = vmatpush.msrb.mxu1 %v2042_v5  ;;  %812 = vmatpush.msrb.mxu2 %v2043_v6  ;;  %v1117_v5 = vld [vmem:[#allocation2 + $0x110] sm:$0xff]  ;;  %v1872_v6 = vld [vmem:[#allocation2 + $0x100] sm:$0xff] }
 0x295   :  { %v509_v7 = vpop.f32.mrf.mxu0  ;;  %v529_v8 = vpop.f32.mrf.mxu1 }
 0x296   :  { %v510_v13 = vadd.f32 %v509_v7, %v2044_v12  ;;  %v530_v14 = vadd.f32 %v529_v8, %v2035_v42  ;;  %v1119_v7 = vld [vmem:[#allocation2 + $0xf0] sm:$0xff]  ;;  %v1120_v8 = vld [vmem:[#allocation2 + $0xf8] sm:$0xff] }
 0x298   :  { %v553_v15 = vrot.slane %v510_v13, 2  ;;  %v557_v16 = vrot.slane %v530_v14, 2  ;;  %v1875_v13 = vld [vmem:[#allocation2 + $0xe8] sm:$0xff]  ;;  %v1122_v14 = vld [vmem:[#allocation2 + $0xd8] sm:$0xff] }
 0x29a   :  { %v555_v18 = vadd.f32 %v553_v15, %v2045_v17  ;;  %v559_v21 = vadd.f32 %v557_v16, %v2046_v19  ;;  %v1123_v15 = vld [vmem:[#allocation2 + $0xe0] sm:$0xff]  ;;  %v1878_v16 = vld [vmem:[#allocation2 + $0xd0] sm:$0xff]  ;;  %v1881_v19 = vld [vmem:[#allocation2 + $0xb8] sm:$0xff] }
 0x29b   :  { %v1125_v17 = vld [vmem:[#allocation2 + $0xc0] sm:$0xff] }
 0x29c   :  { %v560_v22 = vmul.f32 0.5, %v555_v18  ;;  %v564_v24 = vmul.f32 0.5, %v559_v21  ;;  %v549_v30 = vpop.f32.mrf.mxu2  ;;  %v1126_v18 = vld [vmem:[#allocation2 + $0xc8] sm:$0xff] }
 0x29d   :  { %v550_v31 = vadd.f32 %v549_v30, %v2037_v44  ;;  %v1128_v21 = vld [vmem:[#allocation2 + $0xa8] sm:$0xff]  ;;  %v1134_v30 = vld [vmem:[#allocation2 + $0x78] sm:$0xff] }
 0x29e   :  { %1073 = vtanh.f32 %v560_v22  ;;  %v1129_v22 = vld [vmem:[#allocation2 + $0xb0] sm:$0xff] }
 0x29f   :  { %1075 = vtanh.f32 %v564_v24  ;;  %v569_v38 = vrot.slane %v550_v31, 2  ;;  %v1131_v24 = vld [vmem:[#allocation2 + $0x90] sm:$0xff]  ;;  %v1135_v31 = vld [vmem:[#allocation2 + $0x80] sm:$0xff] }
 0x2a4   :  { %v1074_v34 = vpop.eup %1073 }
 0x2a5   :  { %v562_v35 = vmul.f32 0.5, %v1074_v34  ;;  %v1076_v36 = vpop.eup %1075  ;;  %v1137_v34 = vld [vmem:[#allocation2 + $0x60] sm:$0xff] }
 0x2a6   :  { %v566_v41 = vmul.f32 0.5, %v1076_v36  ;;  %v1893_v36 = vld [vmem:[#allocation2 + $0x58] sm:$0xff] }
 0x2a7   :  { %v563_v37 = vadd.f32 0.5, %v562_v35  ;;  %v1138_v35 = vld [vmem:[#allocation2 + $0x68] sm:$0xff] }
 0x2a8   :  { %v567_v45 = vadd.f32 0.5, %v566_v41  ;;  %v1143_v41 = vld [vmem:[#allocation2 + $0x38] sm:$0xff] }
 0x2a9   :  { %v571_v39 = vmul.f32 %v569_v38, %v563_v37  ;;  %v1140_v37 = vld [vmem:[#allocation2 + $0x48] sm:$0xff]  ;;  %v1141_v38 = vld [vmem:[#allocation2 + $0x50] sm:$0xff] }
 0x2aa   :  { %v574_v49 = vsub.f32 1.0, %v567_v45  ;;  %v579_v51 = vmul.f32 %v577_v48, %v567_v45  ;;  %v1145_v45 = vld [vmem:[#allocation2 + $0x20] sm:$0xff] }
 0x2ab   :  { %v572_v43 = vadd.f32 %v571_v39, %v1640_v26  ;;  %v1142_v39 = vld [vmem:[#allocation2 + $0x30] sm:$0xff]  ;;  %v1146_v48 = vld [vmem:[#allocation2] sm:$0xff] }
 0x2ad   :  { %1077 = vtanh.f32 %v572_v43  ;;  %v1144_v43 = vld [vmem:[#allocation2 + $0x18] sm:$0xff] }
 0x2b3   :  { %v1078_v50 = vpop.eup %1077 }
 0x2b4   :  { %v575_v52 = vmul.f32 %v1078_v50, %v574_v49  ;;  %v1147_v49 = vld [vmem:[#allocation2 + $0x8] sm:$0xff] }
 0x2b6   :  { %v580_v53 = vadd.f32 %v579_v51, %v575_v52 }
 0x2b8   :  { %v588_v9 = vrot.slane %v580_v53, 6  ;;  %v2050_v53 = vld [vmem:[#allocation21_spill] sm:$0xff] }
 0x2ba   :  { %v1848_v63 = vsel %vm586_vm14, %v588_v9, %v1781_v55  ;;  %v591_v62 = vsel %vm586_vm14, %v588_v9, 0.0  ;;  %v1113_v55 = vld [vmem:[#allocation2 + $0x120] sm:$0xff]  ;;  %v2051_v9 = vld [vmem:[#allocation19_spill] sm:$0xff] }
 0x2bb   :  { %608 = vmatmul.f32.vlgmr.msrb.gmra.mxu3 %v1848_v63  ;;  %v987_v26 = vrot.slane %v591_v62, 2  ;;  %628 = vmatmul.f32.vlgmr.msra.gmra.mxu0 %v1848_v63 }
 0x2bc   :  { %648 = vmatmul.f32.vlgmr.msra.gmra.mxu1 %v1848_v63  ;;  %817 = vmatpush.msrb.mxu3 %v1854_v47 }
 0x2bd   :  { %877 = vmatpush.msra.mxu0 %v1104_v20  ;;  %897 = vmatpush.msra.mxu1 %v1105_v29  ;;  %v994_v40 = vsel %vm993_vm15, %v986_v61, %v987_v26 }
 0x2be   :  { %818 = vmatpush.msrb.mxu3 %v1858_v25  ;;  %v995_v46 = vsel %vm73_vm0, %v2049_v60, %v994_v40 }
 0x2bf   :  { %878 = vmatpush.msra.mxu0 %v1107_v10  ;;  %898 = vmatpush.msra.mxu1 %v1108_v11  ;;  %1001 = vst [vmem:[#allocation5] sm:$0xff] %v995_v46  ;;  %v2052_v46 = vld [vmem:[#allocation18_spill] sm:$0xff] }
 0x2c0   :  { %819 = vmatpush.msrb.mxu3 %v1863_v2  ;;  %v2053_v10 = vperm.slane %v2052_v46, 2  ;;  %v2054_v11 = vld [vmem:[#allocation26_spill] sm:$0xff] }
 0x2c1   :  { %879 = vmatpush.msra.mxu0 %v1110_v59  ;;  %899 = vmatpush.msra.mxu1 %v1111_v58 }
 0x2c2   :  { %820 = vmatpush.msrb.mxu3 %v1866_v56  ;;  %v1907_v59 = vadd.f32 %v2054_v11, %v2053_v10 }
 0x2c3   :  { %880 = vmatpush.msra.mxu0 %v1113_v55  ;;  %900 = vmatpush.msra.mxu1 %v1114_v33 }
 0x2c4   :  { %821 = vmatpush.msrb.mxu3 %v1869_v1 }
 0x2c5   :  { %881 = vmatpush.msra.mxu0 %v1116_v3  ;;  %901 = vmatpush.msra.mxu1 %v1117_v5 }
 0x2c6   :  { %822 = vmatpush.msrb.mxu3 %v1872_v6 }
 0x2c7   :  { %882 = vmatpush.msra.mxu0 %v1119_v7  ;;  %902 = vmatpush.msra.mxu1 %v1120_v8  ;;  %v673_v8 = vpop.permute.xlu2 %672 }
 0x2c8   :  { %823 = vmatpush.msrb.mxu3 %v1875_v13  ;;  %vm674_vm1 = vcmp.eq.s32.totalorder %v673_v8, 1 }
 0x2c9   :  { %883 = vmatpush.msra.mxu0 %v1122_v14  ;;  %903 = vmatpush.msra.mxu1 %v1123_v15 }
 0x2ca   :  { %824 = vmatpush.msrb.mxu3 %v1878_v16 }
 0x2cb   :  { %884 = vmatpush.msra.mxu0 %v1125_v17  ;;  %904 = vmatpush.msra.mxu1 %v1126_v18 }
 0x2cc   :  { %825 = vmatpush.msrb.mxu3 %v1881_v19 }
 0x2cd   :  { %885 = vmatpush.msra.mxu0 %v1128_v21  ;;  %905 = vmatpush.msra.mxu1 %v1129_v22 }
 0x2ce   :  { %826 = vmatpush.msrb.mxu3 %v1884_v23 }
 0x2cf   :  { %886 = vmatpush.msra.mxu0 %v1131_v24  ;;  %906 = vmatpush.msra.mxu1 %v1132_v27 }
 0x2d0   :  { %827 = vmatpush.msrb.mxu3 %v1887_v28 }
 0x2d1   :  { %887 = vmatpush.msra.mxu0 %v1134_v30  ;;  %907 = vmatpush.msra.mxu1 %v1135_v31 }
 0x2d2   :  { %828 = vmatpush.msrb.mxu3 %v1890_v32 }
 0x2d3   :  { %888 = vmatpush.msra.mxu0 %v1137_v34  ;;  %908 = vmatpush.msra.mxu1 %v1138_v35 }
 0x2d4   :  { %829 = vmatpush.msrb.mxu3 %v1893_v36 }
 0x2d5   :  { %889 = vmatpush.msra.mxu0 %v1140_v37  ;;  %909 = vmatpush.msra.mxu1 %v1141_v38 }
 0x2d6   :  { %830 = vmatpush.msrb.mxu3 %v1466_v57 }
 0x2d7   :  { %890 = vmatpush.msra.mxu0 %v1142_v39  ;;  %910 = vmatpush.msra.mxu1 %v1143_v41 }
 0x2d8   :  { %831 = vmatpush.msrb.mxu3 %v2038_v0 }
 0x2d9   :  { %891 = vmatpush.msra.mxu0 %v1144_v43  ;;  %911 = vmatpush.msra.mxu1 %v1145_v45 }
 0x2da   :  { %832 = vmatpush.msrb.mxu3 %v2041_v4 }
 0x2db   :  { %892 = vmatpush.msra.mxu0 %v1146_v48  ;;  %912 = vmatpush.msra.mxu1 %v1147_v49 }
 0x338   :  { %v629_v50 = vpop.f32.mrf.mxu0 }
 0x339   :  { %v630_v51 = vadd.f32 %v629_v50, %v2035_v42  ;;  %v649_v4 = vpop.f32.mrf.mxu1  ;;  %v770_v50 = vpop.permute.xlu2 %769 }
 0x33a   :  { %v650_v40 = vadd.f32 %v649_v4, %v2037_v44  ;;  %vm771_vm2 = vcmp.eq.s32.totalorder %v770_v50, 1 }
 0x33b   :  { %v653_v54 = vadd.f32 %v630_v51, %v2050_v53 }
 0x33d   :  { %v658_v61 = vmul.f32 0.5, %v653_v54 }
 0x33e   :  { %v609_v57 = vpop.f32.mrf.mxu3 }
 0x33f   :  { %v610_v52 = vadd.f32 %v609_v57, %v2044_v12 }
 0x341   :  { %v652_v0 = vadd.f32 %v610_v52, %v2051_v9 }
 0x343   :  { %v654_v62 = vmul.f32 0.5, %v652_v0 }
 0x345   :  { %1079 = vtanh.f32 %v654_v62 }
 0x346   :  { %1081 = vtanh.f32 %v658_v61 }
 0x34b   :  { %v1080_v26 = vpop.eup %1079 }
 0x34c   :  { %v656_v20 = vmul.f32 0.5, %v1080_v26  ;;  %v1082_v29 = vpop.eup %1081 }
 0x34d   :  { %v660_v55 = vmul.f32 0.5, %v1082_v29 }
 0x34e   :  { %v657_v60 = vadd.f32 0.5, %v656_v20 }
 0x34f   :  { %v661_v3 = vadd.f32 0.5, %v660_v55 }
 0x350   :  { %v662_v58 = vmul.f32 %v657_v60, %v650_v40 }
 0x351   :  { %v665_v5 = vsub.f32 1.0, %v661_v3  ;;  %v667_v15 = vmul.f32 %v661_v3, %v1848_v63 }
 0x352   :  { %v663_v33 = vadd.f32 %v662_v58, %v1907_v59 }
 0x354   :  { %1083 = vtanh.f32 %v663_v33 }
 0x35a   :  { %v1084_v7 = vpop.eup %1083 }
 0x35b   :  { %v666_v14 = vmul.f32 %v1084_v7, %v665_v5 }
 0x35d   :  { %v668_v17 = vadd.f32 %v667_v15, %v666_v14 }
 0x35f   :  { %v675_v18 = vsel %vm674_vm1, %v668_v17, %v1848_v63  ;;  %v1912_v21 = vsel %vm674_vm1, %v668_v17, 0.0  ;;  %v1148_v63 = vld [vmem:[#allocation2 + $0x40] sm:$0xff] }
 0x360   :  { %693 = vmatmul.f32.vlgmr.msra.gmra.mxu2 %v675_v18  ;;  %713 = vmatmul.f32.vlgmr.msra.gmra.mxu3 %v675_v18  ;;  %v762_v41 = vrot.slane %v675_v18, 6 }
 0x361   :  { %733 = vmatmul.f32.vlgmr.msrb.gmra.mxu0 %v675_v18  ;;  %917 = vmatpush.msra.mxu2 %v1854_v47  ;;  %v1149_v47 = vld [vmem:[#allocation2 + $0x28] sm:$0xff] }
 0x363   :  { %918 = vmatpush.msra.mxu2 %v1858_v25  ;;  %v1150_v25 = vld [vmem:[#allocation2 + $0x10] sm:$0xff] }
 0x365   :  { %919 = vmatpush.msra.mxu2 %v1863_v2 }
 0x367   :  { %920 = vmatpush.msra.mxu2 %v1866_v56 }
 0x369   :  { %921 = vmatpush.msra.mxu2 %v1869_v1 }
 0x36b   :  { %922 = vmatpush.msra.mxu2 %v1872_v6 }
 0x36d   :  { %923 = vmatpush.msra.mxu2 %v1875_v13 }
 0x36f   :  { %924 = vmatpush.msra.mxu2 %v1878_v16 }
 0x371   :  { %925 = vmatpush.msra.mxu2 %v1881_v19 }
 0x373   :  { %926 = vmatpush.msra.mxu2 %v1884_v23 }
 0x375   :  { %927 = vmatpush.msra.mxu2 %v1887_v28 }
 0x377   :  { %928 = vmatpush.msra.mxu2 %v1890_v32 }
 0x379   :  { %929 = vmatpush.msra.mxu2 %v1893_v36 }
 0x37b   :  { %930 = vmatpush.msra.mxu2 %v1148_v63 }
 0x37d   :  { %931 = vmatpush.msra.mxu2 %v1149_v47 }
 0x37f   :  { %932 = vmatpush.msra.mxu2 %v1150_v25 }
 0x3de   :  { %v734_v27 = vpop.f32.mrf.mxu0 }
 0x3df   :  { %v735_v28 = vadd.f32 %v734_v27, %v2037_v44 }
 0x3e1   :  { %v754_v34 = vrot.slane %v735_v28, 6 }
 0x3e3   :  { %v694_v2 = vpop.f32.mrf.mxu2  ;;  %v714_v56 = vpop.f32.mrf.mxu3 }
 0x3e4   :  { %v695_v1 = vadd.f32 %v694_v2, %v2044_v12  ;;  %v715_v6 = vadd.f32 %v714_v56, %v2035_v42  ;;  %v870_v56 = vpop.permute.xlu0 %869 }
 0x3e5   :  { %vm871_vm3 = vcmp.eq.s32.totalorder %v870_v56, 1 }
 0x3e6   :  { %v738_v13 = vrot.slane %v695_v1, 6  ;;  %v742_v16 = vrot.slane %v715_v6, 6 }
 0x3e8   :  { %v740_v19 = vadd.f32 %v738_v13, %v2051_v9  ;;  %v744_v22 = vadd.f32 %v742_v16, %v2050_v53 }
 0x3ea   :  { %v745_v23 = vmul.f32 0.5, %v740_v19  ;;  %v749_v24 = vmul.f32 0.5, %v744_v22 }
 0x3ec   :  { %1085 = vtanh.f32 %v745_v23 }
 0x3ed   :  { %1087 = vtanh.f32 %v749_v24 }
 0x3f2   :  { %v1086_v30 = vpop.eup %1085 }
 0x3f3   :  { %v747_v31 = vmul.f32 0.5, %v1086_v30  ;;  %v1088_v32 = vpop.eup %1087 }
 0x3f4   :  { %v751_v37 = vmul.f32 0.5, %v1088_v32 }
 0x3f5   :  { %v748_v35 = vadd.f32 0.5, %v747_v31 }
 0x3f6   :  { %v752_v39 = vadd.f32 0.5, %v751_v37 }
 0x3f7   :  { %v756_v36 = vmul.f32 %v754_v34, %v748_v35 }
 0x3f8   :  { %v759_v43 = vsub.f32 1.0, %v752_v39  ;;  %v764_v49 = vmul.f32 %v762_v41, %v752_v39 }
 0x3f9   :  { %v757_v38 = vadd.f32 %v756_v36, %v1907_v59 }
 0x3fb   :  { %1089 = vtanh.f32 %v757_v38 }
 0x401   :  { %v1090_v45 = vpop.eup %1089 }
 0x402   :  { %v760_v48 = vmul.f32 %v1090_v45, %v759_v43 }
 0x404   :  { %v765_v51 = vadd.f32 %v764_v49, %v760_v48 }
 0x406   :  { %v773_v57 = vrot.slane %v765_v51, 2 }
 0x408   :  { %v775_v52 = vsel %vm771_vm2, %v773_v57, %v675_v18  ;;  %v776_v54 = vsel %vm771_vm2, %v773_v57, 0.0  ;;  %v970_v57 = vpop.permute.xlu1 %969 }
 0x409   :  { %793 = vmatmul.f32.vlgmr.msrb.gmra.mxu1 %v775_v52  ;;  %v988_v0 = vrot.slane %v776_v54, 6  ;;  %813 = vmatmul.f32.vlgmr.msrb.gmra.mxu2 %v775_v52  ;;  %v862_v63 = vrot.slane %v775_v52, 4  ;;  %vm971_vm4 = vcmp.eq.s32.totalorder %v970_v57, 1 }
 0x40a   :  { %833 = vmatmul.f32.vlgmr.msrb.gmra.mxu3 %v775_v52 }
 0x40b   :  { %v1935_v62 = vsel %vm991_vm10, %v1912_v21, %v988_v0 }
 0x486   :  { %v794_v61 = vpop.f32.mrf.mxu1 }
 0x487   :  { %v795_v26 = vadd.f32 %v794_v61, %v2044_v12 }
 0x489   :  { %v838_v4 = vrot.slane %v795_v26, 4 }
 0x48b   :  { %v840_v20 = vadd.f32 %v838_v4, %v2051_v9 }
 0x48c   :  { %v814_v29 = vpop.f32.mrf.mxu2 }
 0x48d   :  { %v845_v40 = vmul.f32 0.5, %v840_v20  ;;  %v815_v60 = vadd.f32 %v814_v29, %v2035_v42  ;;  %v834_v11 = vpop.f32.mrf.mxu3 }
 0x48e   :  { %v835_v55 = vadd.f32 %v834_v11, %v2037_v44 }
 0x48f   :  { %1091 = vtanh.f32 %v845_v40  ;;  %v842_v46 = vrot.slane %v815_v60, 4 }
 0x490   :  { %v854_v7 = vrot.slane %v835_v55, 4 }
 0x491   :  { %v844_v10 = vadd.f32 %v842_v46, %v2050_v53 }
 0x493   :  { %v849_v58 = vmul.f32 0.5, %v844_v10 }
 0x495   :  { %v1092_v33 = vpop.eup %1091  ;;  %1093 = vtanh.f32 %v849_v58 }
 0x496   :  { %v847_v3 = vmul.f32 0.5, %v1092_v33 }
 0x498   :  { %v848_v5 = vadd.f32 0.5, %v847_v3 }
 0x49a   :  { %v856_v8 = vmul.f32 %v854_v7, %v848_v5 }
 0x49b   :  { %v1094_v14 = vpop.eup %1093 }
 0x49c   :  { %v851_v15 = vmul.f32 0.5, %v1094_v14  ;;  %v857_v17 = vadd.f32 %v856_v8, %v1907_v59 }
 0x49e   :  { %1095 = vtanh.f32 %v857_v17  ;;  %v852_v18 = vadd.f32 0.5, %v851_v15 }
 0x4a0   :  { %v859_v21 = vsub.f32 1.0, %v852_v18  ;;  %v864_v25 = vmul.f32 %v862_v63, %v852_v18 }
 0x4a4   :  { %v1096_v47 = vpop.eup %1095 }
 0x4a5   :  { %v860_v2 = vmul.f32 %v1096_v47, %v859_v21 }
 0x4a7   :  { %v865_v1 = vadd.f32 %v864_v25, %v860_v2 }
 0x4a9   :  { %v873_v6 = vrot.slane %v865_v1, 4 }
 0x4ab   :  { %v875_v13 = vsel %vm871_vm3, %v873_v6, %v775_v52  ;;  %v876_v16 = vsel %vm871_vm3, %v873_v6, 0.0 }
 0x4ac   :  { %893 = vmatmul.f32.vlgmr.msra.gmra.mxu0 %v875_v13  ;;  %913 = vmatmul.f32.vlgmr.msra.gmra.mxu1 %v875_v13  ;;  %v989_v0 = vrot.slane %v876_v16, 4 }
 0x4ad   :  { %933 = vmatmul.f32.vlgmr.msra.gmra.mxu2 %v875_v13 }
 0x529   :  { %v894_v19 = vpop.f32.mrf.mxu0  ;;  %v914_v22 = vpop.f32.mrf.mxu1 }
 0x52a   :  { %v895_v23 = vadd.f32 %v894_v19, %v2044_v12  ;;  %v915_v24 = vadd.f32 %v914_v22, %v2035_v42 }
 0x52c   :  { %v938_v27 = vrot.slane %v895_v23, 2  ;;  %v942_v28 = vrot.slane %v915_v24, 2 }
 0x52e   :  { %v940_v30 = vadd.f32 %v938_v27, %v2051_v9  ;;  %v944_v31 = vadd.f32 %v942_v28, %v2050_v53  ;;  %v962_v53 = vrot.slane %v875_v13, 2 }
 0x530   :  { %v945_v32 = vmul.f32 0.5, %v940_v30  ;;  %v949_v34 = vmul.f32 0.5, %v944_v31  ;;  %v934_v35 = vpop.f32.mrf.mxu2 }
 0x531   :  { %v935_v36 = vadd.f32 %v934_v35, %v2037_v44 }
 0x532   :  { %1097 = vtanh.f32 %v945_v32 }
 0x533   :  { %1099 = vtanh.f32 %v949_v34  ;;  %v954_v12 = vrot.slane %v935_v36, 2 }
 0x538   :  { %v1098_v37 = vpop.eup %1097 }
 0x539   :  { %v947_v38 = vmul.f32 0.5, %v1098_v37  ;;  %v1100_v39 = vpop.eup %1099 }
 0x53a   :  { %v951_v42 = vmul.f32 0.5, %v1100_v39 }
 0x53b   :  { %v948_v41 = vadd.f32 0.5, %v947_v38 }
 0x53c   :  { %v952_v9 = vadd.f32 0.5, %v951_v42 }
 0x53d   :  { %v956_v43 = vmul.f32 %v954_v12, %v948_v41 }
 0x53e   :  { %v959_v48 = vsub.f32 1.0, %v952_v9  ;;  %v964_v50 = vmul.f32 %v962_v53, %v952_v9 }
 0x53f   :  { %v957_v45 = vadd.f32 %v956_v43, %v1907_v59 }
 0x541   :  { %1101 = vtanh.f32 %v957_v45 }
 0x547   :  { %v1102_v49 = vpop.eup %1101 }
 0x548   :  { %v960_v51 = vmul.f32 %v1102_v49, %v959_v48 }
 0x54a   :  { %v965_v52 = vadd.f32 %v964_v50, %v960_v51 }
 0x54c   :  { %v973_v44 = vrot.slane %v965_v52, 6 }
 0x54e   :  { %v976_v59 = vsel %vm971_vm4, %v973_v44, 0.0  ;;  %v975_v54 = vsel %vm971_vm4, %v973_v44, %v875_v13 }
 0x54f   :  { %v990_v61 = vrot.slane %v976_v59, 2  ;;  %1003 = vst [vmem:[#allocation6] sm:$0x3] %v975_v54 }
 0x550   :  { %1025 = dma.vmem_to_hbm [thread:$0]  %s1021_s6, 32, %s1023_s25, [#allocation7]  }
 0x551   :  { %v997_v26 = vsel %vm993_vm15, %v989_v0, %v990_v61 }
 0x552   :  { %v998_v4 = vsel %vm73_vm0, %v1935_v62, %v997_v26 }
 0x553   :  { %1002 = vst [vmem:[#allocation5 + $0x8] sm:$0xff] %v998_v4 }
 0x554   :  { %1014 = dma.vmem_to_hbm [thread:$0]  %s1010_s27, 256, %s1012_s30, [#allocation4]  }
 0x555   :  { %1225 = dma.done.wait [#allocation4], 256  }
 0x556   :  { %1226 = vsyncadd [#allocation4], 4294967040 }
 0x557   :  { %1227 = dma.done.wait [#allocation7], 32  }
 0x558   :  { %1228 = vsyncadd [#allocation7], 4294967264 }
 0x559   :  { %1034 = vsyncpa [#allocation3], 1 }
 0x55a   :  { %1035 = vsyncpa [#allocation4], 1 }
 0x55b   :  { %1036 = vsyncpa [#allocation7], 1 }

</bundles_post_ra>
